<compile_context>
chip_gen: v7x
topology: tpu7x:2x2x1
jax: 0.10.0
libtpu: 0.0.40
codegen_flags: <defaults>
</compile_context>

<pallas_src>
import math

import numpy as np
import jax
import jax.numpy as jnp
from jax.experimental import pallas as pl
from jax.experimental.pallas import tpu as pltpu


def _pool_config(feature_size, spatial, dim_in_decoder_arg):
    """Replicates the pooling-kernel-size logic of auxillary_conv_classifier.__init__."""
    ks_h, ks_w = 1, 1
    dim_out_h, dim_out_w = spatial, spatial
    dim_in_decoder = feature_size * dim_out_h * dim_out_w
    while dim_in_decoder > dim_in_decoder_arg and ks_h < spatial:
        ks_h *= 2
        dim_out_h = math.ceil(spatial / ks_h)
        dim_in_decoder = feature_size * dim_out_h * dim_out_w
        if dim_in_decoder > dim_in_decoder_arg:
            ks_w *= 2
            dim_out_w = math.ceil(spatial / ks_w)
            dim_in_decoder = feature_size * dim_out_h * dim_out_w
    if ks_h > 1 or ks_w > 1:
        pad_h = ks_h * (dim_out_h - spatial // ks_h) // 2
        pad_w = ks_w * (dim_out_w - spatial // ks_w) // 2
    else:
        pad_h, pad_w = 0, 0
    return ks_h, ks_w, pad_h, pad_w, dim_in_decoder


def _build_pool_matrix(H, W, ks_h, ks_w, pad_h, pad_w):
    """Batch-independent AvgPool2d((ks_h,ks_w), padding=(pad_h,pad_w)) as a (H*W, S) matrix.

    Acts on channels-first (C, H*W) activations:  pooled = h @ P  (shape (C, S)).
    count_include_pad=True semantics (PyTorch default): divisor is always ks_h*ks_w.
    Built fully vectorized in numpy at trace time (stride == kernel size, as AvgPool2d
    defaults when only kernel_size is given).
    """
    Hp = (H + 2 * pad_h - ks_h) // ks_h + 1
    Wp = (W + 2 * pad_w - ks_w) // ks_w + 1
    in_h = ((np.arange(H)[:, None] + pad_h) // ks_h) == np.arange(Hp)[None, :]   # (H, Hp)
    in_w = ((np.arange(W)[:, None] + pad_w) // ks_w) == np.arange(Wp)[None, :]   # (W, Wp)
    P = (in_h[:, None, :, None] & in_w[None, :, None, :]).astype(np.float32)
    P = P.reshape(H * W, Hp * Wp) / float(ks_h * ks_w)
    return jnp.asarray(P), Hp, Wp


def _make_fused_kernel(B, n_conv):
    """Fused kernel: [1x1 conv + ReLU] * n_conv -> avg-pool matmul -> classifier (+bias).

    Layouts inside the kernel (per batch, static unroll over tiny B):
      h      : (C, H*W)   channels on sublanes, 256-long spatial axis lane-dense
      pooled : (C, S)     via MXU matmul with the (H*W, S) pooling matrix
      wr     : (N, C, S)  classifier weight with the NCHW-flatten order pre-baked
    Classifier = elementwise multiply + reductions (no in-kernel reshapes/transposes).
    """
    if n_conv > 0:
        def kernel(x_ref, w_ref, p_ref, wr_ref, b_ref, out_ref):
            # Batch-invariant operands loaded once, outside the batch loop.
            wr = wr_ref[...]                           # (N, C, S)
            pmat = p_ref[...]                          # (H*W, S)
            ws = [w_ref[k] for k in range(n_conv)]     # n_conv x (C, C)
            rows = []
            for b in range(B):                         # static unroll (B is tiny)
                h = x_ref[b]                           # (C, H*W)
                for k in range(n_conv):                # static unroll; BN is Identity here
                    h = jnp.maximum(
                        jnp.dot(ws[k], h, preferred_element_type=jnp.float32), 0.0)
                pooled = jnp.dot(h, pmat, preferred_element_type=jnp.float32)   # (C, S)
                # partial classifier contraction over S (lane axis): (N, C)
                rows.append(jnp.sum(pooled[None, :, :] * wr, axis=2))
            acc = jnp.stack(rows, axis=0)                       # (B, N, C)
            out_ref[...] = jnp.sum(acc, axis=-1) + b_ref[...]   # (B, N) + (1, N)
    else:
        def kernel(x_ref, p_ref, wr_ref, b_ref, out_ref):
            wr = wr_ref[...]
            pmat = p_ref[...]
            rows = []
            for b in range(B):
                pooled = jnp.dot(x_ref[b], pmat, preferred_element_type=jnp.float32)
                rows.append(jnp.sum(pooled[None, :, :] * wr, axis=2))
            acc = jnp.stack(rows, axis=0)
            out_ref[...] = jnp.sum(acc, axis=-1) + b_ref[...]
    return kernel


def auxillary_conv_classifier_forward(x_nchw, params, cfg):
    """Pallas forward. x_nchw: (B, C, H, W) float32. Returns (logits, loss_sim)."""
    B, C, H, W = x_nchw.shape
    ks_h, ks_w = cfg["ks_h"], cfg["ks_w"]
    pad_h, pad_w = cfg["pad_h"], cfg["pad_w"]
    n_conv = 0 if params["conv_w"] is None else params["conv_w"].shape[0]

    # loss_sup == 'pred': no sim_loss branch.
    # TODO(synk): 'predsim' 3x3 sim_loss conv, 'adaptiveavg' pooling, n_mlp>0 preclassifier
    #             and BatchNorm/dropout branches are Identity / unused in this config.
    loss_sim = None

    pool_mat, Hp, Wp = _build_pool_matrix(H, W, ks_h, ks_w, pad_h, pad_w)
    S = Hp * Wp
    num_classes, dim_in_decoder = params["cls_w"].shape
    assert dim_in_decoder == C * S, "classifier width must match C * pooled-spatial"

    # Free reshapes only (no XLA transposes in the wrapper):
    x3 = x_nchw.reshape(B, C, H * W)                       # channels-first, HW on lanes
    # Bake the NCHW flatten order (c, s)-major directly into the classifier weight.
    wr = params["cls_w"].reshape(num_classes, C, S)        # (N, C, S), trace-time constant
    bias = params["cls_b"].reshape(1, num_classes)         # (1, N)

    vmem = pl.BlockSpec(memory_space=pltpu.MemorySpace.VMEM)
    kernel = _make_fused_kernel(B, n_conv)
    if n_conv > 0:
        # PyTorch 1x1 conv weight is (Cout, Cin, 1, 1); stored here as (n_conv, Cout, Cin),
        # which is exactly the layout needed for  w @ h  in channels-first form (no transpose).
        inputs = (x3, params["conv_w"], pool_mat, wr, bias)
    else:
        inputs = (x3, pool_mat, wr, bias)

    out = pl.pallas_call(
        kernel,
        out_shape=jax.ShapeDtypeStruct((B, num_classes), jnp.float32),
        in_specs=[vmem] * len(inputs),
        out_specs=vmem,
    )(*inputs)

    return out, loss_sim


if __name__ == "__main__":
    # Small config consistent with the module.
    B = 2
    feature_size = 32        # channels ("input_features" arg)
    spatial = 16             # spatial size ("in_size" arg)
    n_conv = 2
    num_classes = 10
    dim_in_decoder_arg = 2048

    ks_h, ks_w, pad_h, pad_w, dim_in_decoder = _pool_config(
        feature_size, spatial, dim_in_decoder_arg)
    # For (C=32, spatial=16): ks=(2,2), pad=(0,0), dim_in_decoder = 32*8*8 = 2048.

    key = jax.random.PRNGKey(0)
    kx, kc, kw, kb = jax.random.split(key, 4)
    x = jax.random.normal(kx, (B, feature_size, spatial, spatial), jnp.float32)
    conv_w = 0.1 * jax.random.normal(
        kc, (n_conv, feature_size, feature_size), jnp.float32)   # (Cout, Cin) per block
    # NOTE: the PyTorch module zero-inits classifier.weight; we use a small deterministic
    # nonzero init so the final linear path is actually exercised (forward semantics identical).
    cls_w = 0.05 * jax.random.normal(kw, (num_classes, dim_in_decoder), jnp.float32)
    cls_b = 0.01 * jax.random.normal(kb, (num_classes,), jnp.float32)

    params = {"conv_w": conv_w, "cls_w": cls_w, "cls_b": cls_b}
    cfg = {"ks_h": ks_h, "ks_w": ks_w, "pad_h": pad_h, "pad_w": pad_w}

    out, loss_sim = auxillary_conv_classifier_forward(x, params, cfg)
    out = jax.block_until_ready(out)

    # Pure-JAX reference (no Pallas) for validation.
    # TODO(synk): padded avg-pool path (pad>0) is supported by the P-matrix construction but
    #             not exercised by this config (pad==0 here), so the reference asserts pad==0.
    h = x
    for k in range(n_conv):
        h = jnp.maximum(jnp.einsum("bchw,oc->bohw", h, conv_w[k]), 0.0)
    assert pad_h == 0 and pad_w == 0  # holds for power-of-two spatial / ks
    Bh, Ch, Hh, Wh = h.shape
    Hp, Wp = Hh // ks_h, Wh // ks_w
    pooled_ref = h.reshape(Bh, Ch, Hp, ks_h, Wp, ks_w).mean(axis=(3, 5))
    flat_ref = pooled_ref.reshape(Bh, -1)
    ref = flat_ref @ cls_w.T + cls_b

    np.testing.assert_allclose(np.asarray(out), np.asarray(ref), rtol=1e-4, atol=1e-4)
    assert loss_sim is None
    print("KERNEL_OK")
</pallas_src>

<mosaic_0001>
module attributes {stable_mosaic.version = 11 : i64} {
  func.func @kernel(%arg0: memref<2x32x256xf32, #tpu.memory_space<vmem>>, %arg1: memref<2x32x32xf32, #tpu.memory_space<vmem>>, %arg2: memref<256x64xf32, #tpu.memory_space<vmem>>, %arg3: memref<10x32x64xf32, #tpu.memory_space<vmem>>, %arg4: memref<1x10xf32, #tpu.memory_space<vmem>>, %arg5: memref<2x10xf32, #tpu.memory_space<vmem>>) attributes {dimension_semantics = [], scalar_prefetch = 0 : i64, scratch_operands = 0 : i64, tpu.core_type = #tpu.core_type<tc>} {
    %c0 = arith.constant 0 : index
    %c0_0 = arith.constant 0 : index
    %c0_1 = arith.constant 0 : index
    %0 = vector.load %arg3[%c0, %c0_0, %c0_1] : memref<10x32x64xf32, #tpu.memory_space<vmem>>, vector<10x32x64xf32>
    %c0_2 = arith.constant 0 : index
    %c0_3 = arith.constant 0 : index
    %1 = vector.load %arg2[%c0_2, %c0_3] : memref<256x64xf32, #tpu.memory_space<vmem>>, vector<256x64xf32>
    %c0_4 = arith.constant 0 : index
    %c0_5 = arith.constant 0 : index
    %c0_6 = arith.constant 0 : index
    %2 = vector.load %arg1[%c0_4, %c0_5, %c0_6] : memref<2x32x32xf32, #tpu.memory_space<vmem>>, vector<1x32x32xf32>
    %3 = vector.shape_cast %2 : vector<1x32x32xf32> to vector<32x32xf32>
    %c1 = arith.constant 1 : index
    %c0_7 = arith.constant 0 : index
    %c0_8 = arith.constant 0 : index
    %4 = vector.load %arg1[%c1, %c0_7, %c0_8] : memref<2x32x32xf32, #tpu.memory_space<vmem>>, vector<1x32x32xf32>
    %5 = vector.shape_cast %4 : vector<1x32x32xf32> to vector<32x32xf32>
    %c0_9 = arith.constant 0 : index
    %c0_10 = arith.constant 0 : index
    %c0_11 = arith.constant 0 : index
    %6 = vector.load %arg0[%c0_9, %c0_10, %c0_11] : memref<2x32x256xf32, #tpu.memory_space<vmem>>, vector<1x32x256xf32>
    %7 = vector.shape_cast %6 : vector<1x32x256xf32> to vector<32x256xf32>
    %cst = arith.constant dense<0.000000e+00> : vector<32x256xf32>
    %8 = tpu.matmul %3, %7, %cst {dimension_numbers = #tpu.dot_dimension_numbers<[1], [0], [0], [1], [0, 0, 1, 1], [], []>} : vector<32x32xf32>, vector<32x256xf32>, vector<32x256xf32> -> vector<32x256xf32>
    %cst_12 = arith.constant 0.000000e+00 : f32
    %9 = vector.broadcast %cst_12 : f32 to vector<32x256xf32>
    %10 = arith.maximumf %8, %9 : vector<32x256xf32>
    %cst_13 = arith.constant dense<0.000000e+00> : vector<32x256xf32>
    %11 = tpu.matmul %5, %10, %cst_13 {dimension_numbers = #tpu.dot_dimension_numbers<[1], [0], [0], [1], [0, 0, 1, 1], [], []>} : vector<32x32xf32>, vector<32x256xf32>, vector<32x256xf32> -> vector<32x256xf32>
    %cst_14 = arith.constant 0.000000e+00 : f32
    %12 = vector.broadcast %cst_14 : f32 to vector<32x256xf32>
    %13 = arith.maximumf %11, %12 : vector<32x256xf32>
    %cst_15 = arith.constant dense<0.000000e+00> : vector<32x64xf32>
    %14 = tpu.matmul %13, %1, %cst_15 {dimension_numbers = #tpu.dot_dimension_numbers<[1], [0], [0], [1], [0, 0, 1, 1], [], []>} : vector<32x256xf32>, vector<256x64xf32>, vector<32x64xf32> -> vector<32x64xf32>
    %15 = vector.shape_cast %14 : vector<32x64xf32> to vector<1x32x64xf32>
    %16 = vector.broadcast %15 : vector<1x32x64xf32> to vector<10x32x64xf32>
    %17 = arith.mulf %16, %0 : vector<10x32x64xf32>
    %cst_16 = arith.constant dense<0.000000e+00> : vector<10x32xf32>
    %18 = vector.multi_reduction <add>, %17, %cst_16 [2] : vector<10x32x64xf32> to vector<10x32xf32>
    %c1_17 = arith.constant 1 : index
    %c0_18 = arith.constant 0 : index
    %c0_19 = arith.constant 0 : index
    %19 = vector.load %arg0[%c1_17, %c0_18, %c0_19] : memref<2x32x256xf32, #tpu.memory_space<vmem>>, vector<1x32x256xf32>
    %20 = vector.shape_cast %19 : vector<1x32x256xf32> to vector<32x256xf32>
    %cst_20 = arith.constant dense<0.000000e+00> : vector<32x256xf32>
    %21 = tpu.matmul %3, %20, %cst_20 {dimension_numbers = #tpu.dot_dimension_numbers<[1], [0], [0], [1], [0, 0, 1, 1], [], []>} : vector<32x32xf32>, vector<32x256xf32>, vector<32x256xf32> -> vector<32x256xf32>
    %cst_21 = arith.constant 0.000000e+00 : f32
    %22 = vector.broadcast %cst_21 : f32 to vector<32x256xf32>
    %23 = arith.maximumf %21, %22 : vector<32x256xf32>
    %cst_22 = arith.constant dense<0.000000e+00> : vector<32x256xf32>
    %24 = tpu.matmul %5, %23, %cst_22 {dimension_numbers = #tpu.dot_dimension_numbers<[1], [0], [0], [1], [0, 0, 1, 1], [], []>} : vector<32x32xf32>, vector<32x256xf32>, vector<32x256xf32> -> vector<32x256xf32>
    %cst_23 = arith.constant 0.000000e+00 : f32
    %25 = vector.broadcast %cst_23 : f32 to vector<32x256xf32>
    %26 = arith.maximumf %24, %25 : vector<32x256xf32>
    %cst_24 = arith.constant dense<0.000000e+00> : vector<32x64xf32>
    %27 = tpu.matmul %26, %1, %cst_24 {dimension_numbers = #tpu.dot_dimension_numbers<[1], [0], [0], [1], [0, 0, 1, 1], [], []>} : vector<32x256xf32>, vector<256x64xf32>, vector<32x64xf32> -> vector<32x64xf32>
    %28 = vector.shape_cast %27 : vector<32x64xf32> to vector<1x32x64xf32>
    %29 = vector.broadcast %28 : vector<1x32x64xf32> to vector<10x32x64xf32>
    %30 = arith.mulf %29, %0 : vector<10x32x64xf32>
    %cst_25 = arith.constant dense<0.000000e+00> : vector<10x32xf32>
    %31 = vector.multi_reduction <add>, %30, %cst_25 [2] : vector<10x32x64xf32> to vector<10x32xf32>
    %32 = vector.shape_cast %18 : vector<10x32xf32> to vector<1x10x32xf32>
    %33 = vector.shape_cast %31 : vector<10x32xf32> to vector<1x10x32xf32>
    %34 = tpu.concatenate %32, %33 in 0 : vector<1x10x32xf32>, vector<1x10x32xf32> -> vector<2x10x32xf32>
    %cst_26 = arith.constant dense<0.000000e+00> : vector<2x10xf32>
    %35 = vector.multi_reduction <add>, %34, %cst_26 [2] : vector<2x10x32xf32> to vector<2x10xf32>
    %c0_27 = arith.constant 0 : index
    %c0_28 = arith.constant 0 : index
    %36 = vector.load %arg4[%c0_27, %c0_28] : memref<1x10xf32, #tpu.memory_space<vmem>>, vector<1x10xf32>
    %37 = vector.broadcast %36 : vector<1x10xf32> to vector<2x10xf32>
    %38 = arith.addf %35, %37 : vector<2x10xf32>
    %c0_29 = arith.constant 0 : index
    %c0_30 = arith.constant 0 : index
    %39 = vector.load %arg5[%c0_29, %c0_30] : memref<2x10xf32, #tpu.memory_space<vmem>>, vector<2x10xf32>
    tpu.vector_store %arg5[%c0_29, %c0_30], %38 {strides = array<i32>} : memref<2x10xf32, #tpu.memory_space<vmem>>, vector<2x10xf32>,
    return
  }
}

</mosaic_0001>

<bundles_post_ra>
// kernel: tpu_custom_call.1
= control target key start
LH: loop header
LB: loop body
LE: loop exit
PB: predicated region body
PF: predicated region fallthrough
CT: control target
= control target key end

     0   :  { %10 = vsyncpa [#allocation3], 0  ;;  %s3207_s0 = inlined_call_operand.hbm [shape: f32[2,32,256], index: 0, kind: input, shape index: {}]   ;;  %s3208_s1 = inlined_call_operand.vmem [shape: f32[2,32,32], index: 1, kind: input, shape index: {}]   ;;  %s3209_s2 = inlined_call_operand.vmem [shape: f32[256,64], index: 2, kind: input, shape index: {}]   ;;  %s3210_s3 = inlined_call_operand.vmem [shape: f32[10,32,64], index: 3, kind: input, shape index: {}]   ;;  %s3211_s4 = inlined_call_operand.vmem [shape: f32[1,10], index: 4, kind: input, shape index: {}]   ;;  %s3212_s5 = inlined_call_operand.hbm [shape: f32[2,10], index: 5, kind: output, shape index: {}]  }
   0x1   :  { %11 = vsyncpa [#allocation4], 0  ;;  %s2118_s18 = smov [#allocation2]   ;;  %s2070_s22 = scalar_lea.hbm %s3207_s0, 2048 }
   0x2   :  { %s17_s19 = sshll.u32 %s2118_s18, 4  ;;  %p2071_p0 = scmp.ne.s32.totalorder %s3207_s0, %s2070_s22  ;;  %s18_s19 = int_to_ptr.vmem [resolvable:$true] %s17_s19 }
   0x3   :  { %p2074_p1 = scmp.lt.u32.totalorder %s2070_s22, %s3207_s0 }
   0x5   :  { %p2076_p2 = pnand %p2074_p1, %p2071_p0 }
   0x7   :  { %2079 = shalt.err (!%p2076_p2)
}
   0x8   :  { %s2080_s27 = scalar_lea.vmem %s18_s19, 2048  ;;  %p2085_p4 = scmp.lt.s32.totalorder %s18_s19, %s18_s19 }
   0x9   :  { %p2081_p3 = scmp.ne.s32.totalorder %s18_s19, %s2080_s27  ;;  %p2086_p5 = scmp.lt.s32.totalorder %s2080_s27, %s2080_s27 }
   0xb   :  { %p2087_p6 = por %p2086_p5, %p2085_p4 }
   0xd   :  { %p2088_p7 = pnand %p2087_p6, %p2081_p3 }
   0xf   :  { %2091 = shalt.err (!%p2088_p7)
}
  0x10   :  { %s2119_s28 = smov 256   ;;  %s2120_s29 = smov 16  }
  0x11   :  { %23 = dma.hbm_to_vmem [thread:$0]  %s3207_s0, 2048, %s18_s19, [#allocation3], %s2119_s28, %s2119_s28, %s2120_s29  }
  0x12   :  { %2114 = dma.done.wait [#allocation3], 2048  }
  0x13   :  { %2115 = vsyncadd [#allocation3], 4294965248  ;;  %v2121_v0 = vmov 0.0   ;;  %v117_v1 = vld [vmem:[#allocation2 + $0x8] sm:$0xff]  ;;  %v119_v2 = vld [vmem:[#allocation2 + $0x18] sm:$0xff]  ;;  %vm124_vm0 = vcmask 261120  }
  0x14   :  { %201 = vmatprep.mubr.f32.mxu1 %v2121_v0  ;;  %v116_v3 = vld [vmem:[#allocation2] sm:$0xff]  ;;  %v1966_v4 = vpack.c.bf16 %v119_v2, %v117_v1  ;;  %v118_v5 = vld [vmem:[#allocation2 + $0x10] sm:$0xff]  ;;  %v121_v6 = vld [vmem:[#allocation2 + $0x28] sm:$0xff]  ;;  %vm468_vm1 = vcmask 523264   ;;  %vm1368_vm2 = vcmask 130112   ;;  %vm1375_vm3 = vcmask 195712  }
  0x15   :  { %v123_v7 = vld [vmem:[#allocation2 + $0x38] sm:$0xff]  ;;  %v1968_v8 = vpack.c.bf16 %v118_v5, %v116_v3  ;;  %v120_v10 = vld [vmem:[#allocation2 + $0x20] sm:$0xff]  ;;  %v122_v11 = vld [vmem:[#allocation2 + $0x30] sm:$0xff]  ;;  %vm1382_vm4 = vcmask 261312   ;;  %vm1745_vm5 = vcmask 1041409   ;;  %vm1747_vm6 = vcmask 1042434  }
  0x16   :  { %v1970_v9 = vpack.c.bf16 %v123_v7, %v121_v6  ;;  %1967 = vmatprep.subr.bf16.mxu1 %v1966_v4  ;;  %v1972_v12 = vpack.c.bf16 %v122_v11, %v120_v10  ;;  %v2170_v13 = vld [vmem:[%s3208_s1] sm:$0xff]  ;;  %v2178_v14 = vld [vmem:[%s3208_s1 + $0x8] sm:$0xff]  ;;  %v2186_v15 = vld [vmem:[%s3208_s1 + $0x10] sm:$0xff]  ;;  %vm1749_vm7 = vcmask 1043459   ;;  %vm1751_vm8 = vcmask 1044484  }
  0x17   :  { %1969 = vmatpush1.bf16.msra.mxu1 %v1968_v8  ;;  %v2194_v16 = vld [vmem:[%s3208_s1 + $0x18] sm:$0xff]  ;;  %v91_v17 = vld [vmem:[%s3209_s2 + $0x80] sm:$0xff]  ;;  %v92_v18 = vld [vmem:[%s3209_s2 + $0x88] sm:$0xff]  ;;  %vm1753_vm9 = vcmask 1045509   ;;  %vm1755_vm10 = vcmask 1046534   ;;  %vm1757_vm11 = vcmask 1047559  }
  0x18   :  { %1971 = vmatprep.subr.bf16.mxu1 %v1970_v9  ;;  %v75_v19 = vld [vmem:[%s3209_s2] sm:$0xff]  ;;  %v2208_v20 = vpack.c.bf16 %v92_v18, %v91_v17  ;;  %v76_v21 = vld [vmem:[%s3209_s2 + $0x8] sm:$0xff]  ;;  %v93_v22 = vld [vmem:[%s3209_s2 + $0x90] sm:$0xff]  ;;  %vm1775_vm12 = vcmask 254976   ;;  %vm1840_vm13 = vcmask 74752  }
  0x19   :  { %v94_v23 = vld [vmem:[%s3209_s2 + $0x98] sm:$0xff]  ;;  %v2219_v24 = vpack.c.bf16 %v76_v21, %v75_v19  ;;  %v77_v26 = vld [vmem:[%s3209_s2 + $0x10] sm:$0xff]  ;;  %v95_v28 = vld [vmem:[%s3209_s2 + $0xa0] sm:$0xff] }
  0x1a   :  { %v2221_v25 = vpack.c.bf16 %v94_v23, %v93_v22  ;;  %v78_v27 = vld [vmem:[%s3209_s2 + $0x18] sm:$0xff]  ;;  %1983 = vmatprep.subr.bf16.mxu0 %v2208_v20  ;;  %v96_v29 = vld [vmem:[%s3209_s2 + $0xa8] sm:$0xff]  ;;  %v79_v32 = vld [vmem:[%s3209_s2 + $0x20] sm:$0xff] }
  0x1b   :  { %1973 = vmatpush1.bf16.msra.mxu1 %v1972_v12  ;;  %1985 = vmatpush3.bf16.msra.mxu0 %v2219_v24  ;;  %v2237_v30 = vpack.c.bf16 %v78_v27, %v77_v26  ;;  %v2240_v31 = vpack.c.bf16 %v96_v29, %v95_v28  ;;  %v80_v33 = vld [vmem:[%s3209_s2 + $0x28] sm:$0xff]  ;;  %v97_v34 = vld [vmem:[%s3209_s2 + $0xb0] sm:$0xff]  ;;  %v98_v35 = vld [vmem:[%s3209_s2 + $0xb8] sm:$0xff] }
  0x1c   :  { %1987 = vmatprep.subr.bf16.mxu0 %v2221_v25  ;;  %v2255_v36 = vpack.c.bf16 %v80_v33, %v79_v32  ;;  %v2258_v37 = vpack.c.bf16 %v98_v35, %v97_v34  ;;  %v81_v38 = vld [vmem:[%s3209_s2 + $0x30] sm:$0xff]  ;;  %v82_v39 = vld [vmem:[%s3209_s2 + $0x38] sm:$0xff]  ;;  %v99_v40 = vld [vmem:[%s3209_s2 + $0xc0] sm:$0xff] }
  0x1d   :  { %v100_v41 = vld [vmem:[%s3209_s2 + $0xc8] sm:$0xff]  ;;  %v2273_v42 = vpack.c.bf16 %v82_v39, %v81_v38  ;;  %v83_v44 = vld [vmem:[%s3209_s2 + $0x40] sm:$0xff]  ;;  %v101_v46 = vld [vmem:[%s3209_s2 + $0xd0] sm:$0xff] }
  0x1e   :  { %1861 = vmatmul.mubr.msk.f32.vlgmr.msra.gmra.mrb[0].mxu1 %vm124_vm0, %v2170_v13  ;;  %v2276_v43 = vpack.c.bf16 %v100_v41, %v99_v40  ;;  %v84_v45 = vld [vmem:[%s3209_s2 + $0x48] sm:$0xff]  ;;  %v102_v47 = vld [vmem:[%s3209_s2 + $0xd8] sm:$0xff]  ;;  %v85_v50 = vld [vmem:[%s3209_s2 + $0x50] sm:$0xff] }
  0x1f   :  { %207 = vmatprep.mubr.f32.mxu1 %v2121_v0  ;;  %1989 = vmatpush3.bf16.msra.mxu0 %v2237_v30  ;;  %v2291_v48 = vpack.c.bf16 %v84_v45, %v83_v44  ;;  %v2294_v49 = vpack.c.bf16 %v102_v47, %v101_v46  ;;  %v86_v51 = vld [vmem:[%s3209_s2 + $0x58] sm:$0xff]  ;;  %v103_v52 = vld [vmem:[%s3209_s2 + $0xe0] sm:$0xff]  ;;  %v104_v53 = vld [vmem:[%s3209_s2 + $0xe8] sm:$0xff] }
  0x20   :  { %1991 = vmatprep.subr.bf16.mxu0 %v2240_v31  ;;  %v2309_v54 = vpack.c.bf16 %v86_v51, %v85_v50  ;;  %v2312_v55 = vpack.c.bf16 %v104_v53, %v103_v52  ;;  %v87_v56 = vld [vmem:[%s3209_s2 + $0x60] sm:$0xff]  ;;  %v88_v57 = vld [vmem:[%s3209_s2 + $0x68] sm:$0xff]  ;;  %v593_v17 = vld [vmem:[#allocation2 + $0x58] sm:$0xff] }
  0x21   :  { %v2321_v58 = vpack.c.bf16 %v88_v57, %v87_v56  ;;  %v591_v12 = vld [vmem:[#allocation2 + $0x48] sm:$0xff]  ;;  %v590_v26 = vld [vmem:[#allocation2 + $0x40] sm:$0xff]  ;;  %v592_v27 = vld [vmem:[#allocation2 + $0x50] sm:$0xff] }
  0x22   :  { %1862 = vmatmul.mubr.msk.f32.gmra.mrb[2].mxu1 %vm124_vm0, %v2178_v14  ;;  %v2014_v23 = vpack.c.bf16 %v593_v17, %v591_v12  ;;  %v595_v28 = vld [vmem:[#allocation2 + $0x68] sm:$0xff]  ;;  %v597_v29 = vld [vmem:[#allocation2 + $0x78] sm:$0xff]  ;;  %v2328_v32 = vld [vmem:[%s3208_s1 + $0x20] sm:$0xff]  ;;  %v2016_v33 = vpack.c.bf16 %v592_v27, %v590_v26 }
  0x23   :  { %213 = vmatprep.mubr.f32.mxu1 %v2121_v0  ;;  %1993 = vmatpush3.bf16.msra.mxu0 %v2255_v36  ;;  %v2018_v34 = vpack.c.bf16 %v597_v29, %v595_v28  ;;  %v594_v35 = vld [vmem:[#allocation2 + $0x60] sm:$0xff]  ;;  %v596_v38 = vld [vmem:[#allocation2 + $0x70] sm:$0xff]  ;;  %v2336_v39 = vld [vmem:[%s3208_s1 + $0x28] sm:$0xff] }
  0x24   :  { %1995 = vmatprep.subr.bf16.mxu0 %v2258_v37  ;;  %v2020_v40 = vpack.c.bf16 %v596_v38, %v594_v35  ;;  %v2344_v41 = vld [vmem:[%s3208_s1 + $0x30] sm:$0xff]  ;;  %v2352_v44 = vld [vmem:[%s3208_s1 + $0x38] sm:$0xff]  ;;  %v2436_v26 = vld [vmem:[%s3210_s3 + $0x48] sm:$0xff] }
  0x25   :  { %v2455_v38 = vld [vmem:[%s3210_s3 + $0x68] sm:$0xff] }
  0x26   :  { %1863 = vmatmul.mubr.msk.f32.gmra.mrb[4].mxu1 %vm124_vm0, %v2186_v15 }
  0x27   :  { %219 = vmatprep.mubr.f32.mxu1 %v2121_v0  ;;  %1997 = vmatpush3.bf16.msra.mxu0 %v2273_v42 }
  0x28   :  { %1999 = vmatprep.subr.bf16.mxu0 %v2276_v43 }
  0x2a   :  { %1864 = vmatmul.mubr.msk.f32.gmra.mrb[6].mxu1 %vm124_vm0, %v2194_v16 }
  0x2b   :  { %310 = vmatprep.mubr.f32.mxu1 %v2121_v0  ;;  %2001 = vmatpush3.bf16.msra.mxu0 %v2291_v48 }
  0x2c   :  { %2003 = vmatprep.subr.bf16.mxu0 %v2294_v49 }
  0x2f   :  { %2005 = vmatpush3.bf16.msra.mxu0 %v2309_v54 }
  0x30   :  { %2007 = vmatprep.subr.bf16.mxu0 %v2312_v55 }
  0x33   :  { %2009 = vmatpush3.bf16.msra.mxu0 %v2321_v58 }
  0xf1   :  { %v203_v59 = vpop.f32.mrb[0].mxu1 }
  0xf2   :  { %v205_v60 = vpop.f32.mrb[1].mxu1  ;;  %v226_v62 = vmax.f32 %v203_v59, 0.0 }
  0xf3   :  { %v227_v2 = vmax.f32 %v205_v60, 0.0 }
  0xf5   :  { %v209_v61 = vpop.f32.mrb[2].mxu1 }
  0xf6   :  { %v228_v63 = vmax.f32 %v209_v61, 0.0  ;;  %v211_v1 = vpop.f32.mrb[3].mxu1 }
  0xf7   :  { %v229_v3 = vmax.f32 %v211_v1, 0.0 }
  0xf8   :  { %v1976_v4 = vpack.c.bf16 %v228_v63, %v226_v62 }
  0xf9   :  { %v1974_v5 = vpack.c.bf16 %v229_v3, %v227_v2  ;;  %v215_v6 = vpop.f32.mrb[4].mxu1 }
  0xfa   :  { %v217_v7 = vpop.f32.mrb[5].mxu1  ;;  %v230_v9 = vmax.f32 %v215_v6, 0.0 }
  0xfb   :  { %1975 = vmatprep.subr.bf16.mxu1 %v1974_v5  ;;  %v231_v18 = vmax.f32 %v217_v7, 0.0 }
  0xfc   :  { %1977 = vmatpush1.bf16.msra.mxu1 %v1976_v4 }
  0xfd   :  { %v221_v8 = vpop.f32.mrb[6].mxu1 }
  0xfe   :  { %v232_v10 = vmax.f32 %v221_v8, 0.0  ;;  %v223_v11 = vpop.f32.mrb[7].mxu1 }
  0xff   :  { %v233_v19 = vmax.f32 %v223_v11, 0.0 }
 0x100   :  { %v1980_v21 = vpack.c.bf16 %v232_v10, %v230_v9 }
 0x101   :  { %v1978_v22 = vpack.c.bf16 %v233_v19, %v231_v18  ;;  %v2424_v19 = vld [vmem:[%s3210_s3 + $0x20] sm:$0xff] }
 0x103   :  { %1979 = vmatprep.subr.bf16.mxu1 %v1978_v22 }
 0x104   :  { %1981 = vmatpush1.bf16.msra.mxu1 %v1980_v21 }
 0x105   :  { %2015 = vmatprep.subr.bf16.mxu1 %v2014_v23  ;;  %v2431_v23 = vld [vmem:[%s3210_s3 + $0x28] sm:$0xff] }
 0x107   :  { %1865 = vmatmul.mubr.msk.f32.vlgmr.msra.gmra.mrb[8].mxu1 %vm124_vm0, %v2328_v32 }
 0x108   :  { %316 = vmatprep.mubr.f32.mxu1 %v2121_v0  ;;  %2017 = vmatpush1.bf16.msra.mxu1 %v2016_v33 }
 0x109   :  { %2019 = vmatprep.subr.bf16.mxu1 %v2018_v34 }
 0x10b   :  { %1866 = vmatmul.mubr.msk.f32.gmra.mrb[10].mxu1 %vm124_vm0, %v2336_v39 }
 0x10c   :  { %322 = vmatprep.mubr.f32.mxu1 %v2121_v0  ;;  %2021 = vmatpush1.bf16.msra.mxu1 %v2020_v40 }
 0x10f   :  { %1867 = vmatmul.mubr.msk.f32.gmra.mrb[12].mxu1 %vm124_vm0, %v2344_v41 }
 0x110   :  { %328 = vmatprep.mubr.f32.mxu1 %v2121_v0 }
 0x113   :  { %1868 = vmatmul.mubr.msk.f32.gmra.mrb[14].mxu1 %vm124_vm0, %v2352_v44 }
 0x114   :  { %662 = vmatprep.mubr.f32.mxu1 %v2121_v0 }
 0x117   :  { %1869 = vmatmul.mubr.msk.f32.vlgmr.msra.gmra.mrb[16].mxu1 %vm124_vm0, %v2170_v13  ;;  %v105_v13 = vld [vmem:[%s3209_s2 + $0xf0] sm:$0xff] }
 0x118   :  { %668 = vmatprep.mubr.f32.mxu1 %v2121_v0 }
 0x11b   :  { %1870 = vmatmul.mubr.msk.f32.gmra.mrb[18].mxu1 %vm124_vm0, %v2178_v14  ;;  %v106_v14 = vld [vmem:[%s3209_s2 + $0xf8] sm:$0xff] }
 0x11c   :  { %674 = vmatprep.mubr.f32.mxu1 %v2121_v0  ;;  %v2375_v45 = vpack.c.bf16 %v106_v14, %v105_v13  ;;  %v2464_v13 = vld [vmem:[%s3210_s3 + $0x60] sm:$0xff] }
 0x11e   :  { %2011 = vmatprep.subr.bf16.mxu0 %v2375_v45 }
 0x11f   :  { %1871 = vmatmul.mubr.msk.f32.gmra.mrb[20].mxu1 %vm124_vm0, %v2186_v15  ;;  %v89_v15 = vld [vmem:[%s3209_s2 + $0x70] sm:$0xff] }
 0x120   :  { %680 = vmatprep.mubr.f32.mxu1 %v2121_v0 }
 0x123   :  { %1872 = vmatmul.mubr.msk.f32.gmra.mrb[22].mxu1 %vm124_vm0, %v2194_v16  ;;  %v90_v16 = vld [vmem:[%s3209_s2 + $0x78] sm:$0xff] }
 0x124   :  { %759 = vmatprep.mubr.f32.mxu1 %v2121_v0  ;;  %v2383_v46 = vpack.c.bf16 %v90_v16, %v89_v15 }
 0x126   :  { %2013 = vmatpush3.bf16.msra.mxu0 %v2383_v46 }
 0x127   :  { %2031 = vmatprep.subr.bf16.mxu0 %v2208_v20 }
 0x1da   :  { %v312_v47 = vpop.f32.mrb[8].mxu1 }
 0x1db   :  { %v314_v50 = vpop.f32.mrb[9].mxu1  ;;  %v335_v52 = vmax.f32 %v312_v47, 0.0 }
 0x1dc   :  { %v336_v51 = vmax.f32 %v314_v50, 0.0 }
 0x1de   :  { %v318_v53 = vpop.f32.mrb[10].mxu1  ;;  %407 = vmatprep.mubr.f32.mxu0 %v336_v51 }
 0x1df   :  { %v337_v56 = vmax.f32 %v318_v53, 0.0  ;;  %v320_v57 = vpop.f32.mrb[11].mxu1  ;;  %408 = vmatmul.mubr.f32.vlgmr.msra.gmra.mrb[0].mxu0 %v335_v52  ;;  %v2484_v53 = vld [vmem:[%s3210_s3 + $0x80] sm:$0xff] }
 0x1e0   :  { %v338_v59 = vmax.f32 %v320_v57, 0.0  ;;  %2033 = vmatpush3.bf16.msra.mxu0 %v2219_v24 }
 0x1e1   :  { %2035 = vmatprep.subr.bf16.mxu0 %v2221_v25 }
 0x1e2   :  { %412 = vmatprep.mubr.f32.mxu0 %v338_v59  ;;  %v324_v60 = vpop.f32.mrb[12].mxu1  ;;  %v2492_v59 = vld [vmem:[%s3210_s3 + $0xa8] sm:$0xff] }
 0x1e3   :  { %413 = vmatmul.mubr.f32.gmra.mrb[2].mxu0 %v337_v56  ;;  %v339_v61 = vmax.f32 %v324_v60, 0.0  ;;  %v326_v62 = vpop.f32.mrb[13].mxu1 }
 0x1e4   :  { %v340_v20 = vmax.f32 %v326_v62, 0.0  ;;  %2037 = vmatpush3.bf16.msra.mxu0 %v2237_v30  ;;  %v2500_v62 = vld [vmem:[%s3210_s3 + $0xa0] sm:$0xff] }
 0x1e5   :  { %2039 = vmatprep.subr.bf16.mxu0 %v2240_v31 }
 0x1e6   :  { %v330_v63 = vpop.f32.mrb[14].mxu1  ;;  %417 = vmatprep.mubr.f32.mxu0 %v340_v20 }
 0x1e7   :  { %v341_v1 = vmax.f32 %v330_v63, 0.0  ;;  %v332_v2 = vpop.f32.mrb[15].mxu1  ;;  %418 = vmatmul.mubr.f32.gmra.mrb[4].mxu0 %v339_v61 }
 0x1e8   :  { %v342_v3 = vmax.f32 %v332_v2, 0.0  ;;  %2041 = vmatpush3.bf16.msra.mxu0 %v2255_v36 }
 0x1e9   :  { %2043 = vmatprep.subr.bf16.mxu0 %v2258_v37 }
 0x1ea   :  { %v664_v24 = vpop.f32.mrb[16].mxu1  ;;  %422 = vmatprep.mubr.f32.mxu0 %v342_v3 }
 0x1eb   :  { %v666_v25 = vpop.f32.mrb[17].mxu1  ;;  %423 = vmatmul.mubr.f32.gmra.mrb[6].mxu0 %v341_v1  ;;  %v687_v4 = vmax.f32 %v664_v24, 0.0  ;;  %v2508_v1 = vld [vmem:[%s3210_s3 + $0xc8] sm:$0xff]  ;;  %v2516_v24 = vld [vmem:[%s3210_s3 + $0xc0] sm:$0xff] }
 0x1ec   :  { %2045 = vmatpush3.bf16.msra.mxu0 %v2273_v42  ;;  %v688_v30 = vmax.f32 %v666_v25, 0.0 }
 0x1ed   :  { %2047 = vmatprep.subr.bf16.mxu0 %v2276_v43 }
 0x1ee   :  { %v670_v31 = vpop.f32.mrb[18].mxu1 }
 0x1ef   :  { %v689_v5 = vmax.f32 %v670_v31, 0.0  ;;  %v672_v6 = vpop.f32.mrb[19].mxu1  ;;  %v2122_v31 = vmov 0  }
 0x1f0   :  { %v690_v7 = vmax.f32 %v672_v6, 0.0  ;;  %2049 = vmatpush3.bf16.msra.mxu0 %v2291_v48  ;;  %2068 = vset.pattern.permute.xlu0 %v2122_v31 }
 0x1f1   :  { %v2024_v8 = vpack.c.bf16 %v689_v5, %v687_v4  ;;  %2051 = vmatprep.subr.bf16.mxu0 %v2294_v49  ;;  %2069 = vset.pattern.permute.xlu1 %v2122_v31  ;;  %v2612_v31 = vld [vmem:[%s3210_s3 + $0x50] sm:$0xff] }
 0x1f2   :  { %v2022_v36 = vpack.c.bf16 %v690_v7, %v688_v30  ;;  %v676_v37 = vpop.f32.mrb[20].mxu1  ;;  %v2524_v30 = vld [vmem:[%s3210_s3 + $0xe8] sm:$0xff]  ;;  %v2532_v7 = vld [vmem:[%s3210_s3 + $0xe0] sm:$0xff] }
 0x1f3   :  { %v678_v9 = vpop.f32.mrb[21].mxu1  ;;  %v691_v42 = vmax.f32 %v676_v37, 0.0 }
 0x1f4   :  { %2023 = vmatprep.subr.bf16.mxu1 %v2022_v36  ;;  %2053 = vmatpush3.bf16.msra.mxu0 %v2309_v54  ;;  %v692_v43 = vmax.f32 %v678_v9, 0.0 }
 0x1f5   :  { %2025 = vmatpush1.bf16.msra.mxu1 %v2024_v8  ;;  %2055 = vmatprep.subr.bf16.mxu0 %v2312_v55 }
 0x1f6   :  { %v682_v10 = vpop.f32.mrb[22].mxu1 }
 0x1f7   :  { %v693_v11 = vmax.f32 %v682_v10, 0.0  ;;  %v684_v12 = vpop.f32.mrb[23].mxu1 }
 0x1f8   :  { %v694_v17 = vmax.f32 %v684_v12, 0.0  ;;  %2057 = vmatpush3.bf16.msra.mxu0 %v2321_v58  ;;  %v2417_v58 = vld [vmem:[%s3210_s3] sm:$0xff] }
 0x1f9   :  { %v2028_v48 = vpack.c.bf16 %v693_v11, %v691_v42  ;;  %2059 = vmatprep.subr.bf16.mxu0 %v2375_v45  ;;  %v2543_v42 = vld [vmem:[%s3210_s3 + $0x108] sm:$0xff] }
 0x1fa   :  { %v2026_v49 = vpack.c.bf16 %v694_v17, %v692_v43  ;;  %v2548_v43 = vld [vmem:[%s3210_s3 + $0x100] sm:$0xff] }
 0x1fc   :  { %2027 = vmatprep.subr.bf16.mxu1 %v2026_v49  ;;  %2061 = vmatpush3.bf16.msra.mxu0 %v2383_v46  ;;  %v2474_v46 = vld [vmem:[%s3210_s3 + $0x88] sm:$0xff] }
 0x1fd   :  { %2029 = vmatpush1.bf16.msra.mxu1 %v2028_v48  ;;  %v2559_v49 = vld [vmem:[%s3210_s3 + $0x128] sm:$0xff] }
 0x200   :  { %1873 = vmatmul.mubr.msk.f32.vlgmr.msra.gmra.mrb[24].mxu1 %vm124_vm0, %v2328_v32  ;;  %v2446_v32 = vld [vmem:[%s3210_s3 + $0x40] sm:$0xff] }
 0x201   :  { %765 = vmatprep.mubr.f32.mxu1 %v2121_v0 }
 0x204   :  { %1874 = vmatmul.mubr.msk.f32.gmra.mrb[26].mxu1 %vm124_vm0, %v2336_v39 }
 0x205   :  { %771 = vmatprep.mubr.f32.mxu1 %v2121_v0 }
 0x208   :  { %1875 = vmatmul.mubr.msk.f32.gmra.mrb[28].mxu1 %vm124_vm0, %v2344_v41 }
 0x209   :  { %777 = vmatprep.mubr.f32.mxu1 %v2121_v0 }
 0x20c   :  { %1876 = vmatmul.mubr.msk.f32.gmra.mrb[30].mxu1 %vm124_vm0, %v2352_v44 }
 0x2b2   :  { %v1910_v54 = vpop.f32.mrb[0].mxu0 }
 0x2b3   :  { %v1911_v55 = vpop.f32.mrb[1].mxu0 }
 0x2b4   :  { %v2419_v18 = vadd.f32 %v1911_v55, %v1910_v54 }
 0x2b6   :  { %v1913_v21 = vpop.f32.mrb[2].mxu0  ;;  %v428_v0 = vmul.f32 %v2419_v18, %v2417_v58  ;;  %v432_v29 = vmul.f32 %v2419_v18, %v2424_v19  ;;  %v436_v44 = vmul.f32 %v2419_v18, %v2446_v32  ;;  %v440_v51 = vmul.f32 %v2419_v18, %v2464_v13 }
 0x2b7   :  { %v1914_v22 = vpop.f32.mrb[3].mxu0  ;;  %v444_v61 = vmul.f32 %v2419_v18, %v2484_v53  ;;  %v448_v3 = vmul.f32 %v2419_v18, %v2500_v62  ;;  %v452_v6 = vmul.f32 %v2419_v18, %v2516_v24  ;;  %v456_v9 = vmul.f32 %v2419_v18, %v2532_v7 }
 0x2b8   :  { %v2438_v27 = vadd.f32 %v1914_v22, %v1913_v21  ;;  %v469_v28 = vsel %vm468_vm1, %v428_v0, 0.0  ;;  %v481_v41 = vsel %vm468_vm1, %v432_v29, 0.0  ;;  %v493_v50 = vsel %vm468_vm1, %v436_v44, 0.0  ;;  %v2564_v21 = vld [vmem:[%s3210_s3 + $0x120] sm:$0xff] }
 0x2b9   :  { %470 = vadd.xlane.f32.xlu0 %v469_v28  ;;  %v505_v60 = vsel %vm468_vm1, %v440_v51, 0.0  ;;  %v517_v2 = vsel %vm468_vm1, %v444_v61, 0.0  ;;  %v529_v5 = vsel %vm468_vm1, %v448_v3, 0.0  ;;  %v541_v37 = vsel %vm468_vm1, %v452_v6, 0.0 }
 0x2ba   :  { %v433_v33 = vmul.f32 %v2438_v27, %v2431_v23  ;;  %v437_v34 = vmul.f32 %v2438_v27, %v2436_v26  ;;  %v1916_v35 = vpop.f32.mrb[4].mxu0  ;;  %v441_v15 = vmul.f32 %v2438_v27, %v2455_v38  ;;  %v445_v57 = vmul.f32 %v2438_v27, %v2474_v46 }
 0x2bb   :  { %v1917_v39 = vpop.f32.mrb[5].mxu0  ;;  %v449_v63 = vmul.f32 %v2438_v27, %v2492_v59  ;;  %v453_v4 = vmul.f32 %v2438_v27, %v2508_v1  ;;  %v457_v36 = vmul.f32 %v2438_v27, %v2524_v30  ;;  %v553_v12 = vsel %vm468_vm1, %v456_v9, 0.0  ;;  %v2623_v9 = vld [vmem:[%s3210_s3 + $0x58] sm:$0xff] }
 0x2bc   :  { %v484_v40 = vsel %vm468_vm1, %v433_v33, 0.0  ;;  %v2466_v14 = vadd.f32 %v1917_v39, %v1916_v35  ;;  %v496_v45 = vsel %vm468_vm1, %v437_v34, 0.0  ;;  %v508_v56 = vsel %vm468_vm1, %v441_v15, 0.0  ;;  %v2575_v35 = vld [vmem:[%s3210_s3 + $0x10] sm:$0xff] }
 0x2bd   :  { %485 = vadd.xlane.f32.xlu1 %v484_v40  ;;  %482 = vadd.xlane.f32.xlu0 %v481_v41  ;;  %v520_v20 = vsel %vm468_vm1, %v445_v57, 0.0  ;;  %v532_v25 = vsel %vm468_vm1, %v449_v63, 0.0  ;;  %v544_v8 = vsel %vm468_vm1, %v453_v4, 0.0  ;;  %v556_v10 = vsel %vm468_vm1, %v457_v36, 0.0  ;;  %v2580_v41 = vld [vmem:[%s3210_s3 + $0x8] sm:$0xff]  ;;  %v2596_v57 = vld [vmem:[%s3210_s3 + $0x18] sm:$0xff] }
 0x2be   :  { %v1919_v16 = vpop.f32.mrb[6].mxu0  ;;  %v461_v17 = vmul.f32 %v2438_v27, %v2543_v42  ;;  %v460_v48 = vmul.f32 %v2419_v18, %v2548_v43  ;;  %v465_v22 = vmul.f32 %v2438_v27, %v2559_v49  ;;  %v464_v34 = vmul.f32 %v2419_v18, %v2564_v21  ;;  %v2607_v4 = vld [vmem:[%s3210_s3 + $0x38] sm:$0xff] }
 0x2bf   :  { %v1920_v47 = vpop.f32.mrb[7].mxu0 }
 0x2c0   :  { %v2479_v52 = vadd.f32 %v1920_v47, %v1919_v16  ;;  %v568_v29 = vsel %vm468_vm1, %v461_v17, 0.0  ;;  %v565_v33 = vsel %vm468_vm1, %v460_v48, 0.0  ;;  %v580_v15 = vsel %vm468_vm1, %v465_v22, 0.0 }
 0x2c1   :  { %497 = vadd.xlane.f32.xlu1 %v496_v45  ;;  %494 = vadd.xlane.f32.xlu0 %v493_v50  ;;  %v430_v45 = vmul.f32 %v2466_v14, %v2575_v35  ;;  %v577_v16 = vsel %vm468_vm1, %v464_v34, 0.0  ;;  %v429_v47 = vmul.f32 %v2438_v27, %v2580_v41  ;;  %v2591_v50 = vld [vmem:[%s3210_s3 + $0x30] sm:$0xff] }
 0x2c2   :  { %v434_v61 = vmul.f32 %v2466_v14, %v2591_v50  ;;  %v435_v36 = vmul.f32 %v2479_v52, %v2607_v4  ;;  %v439_v17 = vmul.f32 %v2479_v52, %v2623_v9  ;;  %v2660_v34 = vld [vmem:[%s3210_s3 + $0xb0] sm:$0xff] }
 0x2c3   :  { %v472_v63 = vsel %vm468_vm1, %v429_v47, 0.0 }
 0x2c5   :  { %509 = vadd.xlane.f32.xlu1 %v508_v56  ;;  %506 = vadd.xlane.f32.xlu0 %v505_v60 }
 0x2c9   :  { %521 = vadd.xlane.f32.xlu1 %v520_v20  ;;  %518 = vadd.xlane.f32.xlu0 %v517_v2  ;;  %v475_v20 = vsel %vm468_vm1, %v430_v45, 0.0  ;;  %v431_v2 = vmul.f32 %v2479_v52, %v2596_v57  ;;  %v450_v45 = vmul.f32 %v2466_v14, %v2660_v34 }
 0x2cb   :  { %v478_v6 = vsel %vm468_vm1, %v431_v2, 0.0  ;;  %v535_v47 = vsel %vm468_vm1, %v450_v45, 0.0 }
 0x2cd   :  { %533 = vadd.xlane.f32.xlu1 %v532_v25  ;;  %530 = vadd.xlane.f32.xlu0 %v529_v5 }
 0x2d1   :  { %545 = vadd.xlane.f32.xlu1 %v544_v8  ;;  %542 = vadd.xlane.f32.xlu0 %v541_v37  ;;  %v487_v8 = vsel %vm468_vm1, %v434_v61, 0.0  ;;  %v438_v37 = vmul.f32 %v2466_v14, %v2612_v31  ;;  %v2692_v61 = vld [vmem:[%s3210_s3 + $0xf0] sm:$0xff] }
 0x2d2   :  { %v458_v2 = vmul.f32 %v2466_v14, %v2692_v61 }
 0x2d3   :  { %v761_v11 = vpop.f32.mrb[24].mxu1 }
 0x2d4   :  { %v784_v54 = vmax.f32 %v761_v11, 0.0  ;;  %v763_v55 = vpop.f32.mrb[25].mxu1  ;;  %v490_v11 = vsel %vm468_vm1, %v435_v36, 0.0 }
 0x2d5   :  { %557 = vadd.xlane.f32.xlu1 %v556_v10  ;;  %554 = vadd.xlane.f32.xlu0 %v553_v12  ;;  %v785_v0 = vmax.f32 %v763_v55, 0.0  ;;  %v2628_v10 = vld [vmem:[%s3210_s3 + $0x70] sm:$0xff]  ;;  %v499_v12 = vsel %vm468_vm1, %v438_v37, 0.0  ;;  %v2719_v37 = vld [vmem:[%s3210_s3 + $0x118] sm:$0xff] }
 0x2d6   :  { %v442_v48 = vmul.f32 %v2466_v14, %v2628_v10  ;;  %v2644_v55 = vld [vmem:[%s3210_s3 + $0x90] sm:$0xff] }
 0x2d7   :  { %v767_v28 = vpop.f32.mrb[26].mxu1  ;;  %856 = vmatprep.mubr.f32.mxu0 %v785_v0  ;;  %v502_v0 = vsel %vm468_vm1, %v439_v17, 0.0 }
 0x2d8   :  { %v786_v39 = vmax.f32 %v767_v28, 0.0  ;;  %v769_v40 = vpop.f32.mrb[27].mxu1  ;;  %857 = vmatmul.mubr.f32.vlgmr.msra.gmra.mrb[8].mxu0 %v784_v54  ;;  %v2639_v54 = vld [vmem:[%s3210_s3 + $0x78] sm:$0xff]  ;;  %v511_v22 = vsel %vm468_vm1, %v442_v48, 0.0  ;;  %v463_v48 = vmul.f32 %v2479_v52, %v2719_v37 }
 0x2d9   :  { %569 = vadd.xlane.f32.xlu1 %v568_v29  ;;  %566 = vadd.xlane.f32.xlu0 %v565_v33  ;;  %v787_v44 = vmax.f32 %v769_v40, 0.0  ;;  %v443_v28 = vmul.f32 %v2479_v52, %v2639_v54  ;;  %v446_v29 = vmul.f32 %v2466_v14, %v2644_v55  ;;  %v2655_v33 = vld [vmem:[%s3210_s3 + $0x98] sm:$0xff] }
 0x2db   :  { %861 = vmatprep.mubr.f32.mxu0 %v787_v44  ;;  %v773_v18 = vpop.f32.mrb[28].mxu1  ;;  %v523_v40 = vsel %vm468_vm1, %v446_v29, 0.0  ;;  %v447_v44 = vmul.f32 %v2479_v52, %v2655_v33 }
 0x2dc   :  { %862 = vmatmul.mubr.f32.gmra.mrb[10].mxu0 %v786_v39  ;;  %v788_v51 = vmax.f32 %v773_v18, 0.0  ;;  %v775_v56 = vpop.f32.mrb[29].mxu1  ;;  %v514_v39 = vsel %vm468_vm1, %v443_v28, 0.0  ;;  %v2671_v18 = vld [vmem:[%s3210_s3 + $0xb8] sm:$0xff]  ;;  %v574_v28 = vsel %vm468_vm1, %v463_v48, 0.0 }
 0x2dd   :  { %581 = vadd.xlane.f32.xlu1 %v580_v15  ;;  %578 = vadd.xlane.f32.xlu0 %v577_v16  ;;  %v789_v60 = vmax.f32 %v775_v56, 0.0  ;;  %v2676_v15 = vld [vmem:[%s3210_s3 + $0xd0] sm:$0xff]  ;;  %v526_v16 = vsel %vm468_vm1, %v447_v44, 0.0 }
 0x2de   :  { %v454_v56 = vmul.f32 %v2466_v14, %v2676_v15 }
 0x2df   :  { %v779_v27 = vpop.f32.mrb[30].mxu1  ;;  %866 = vmatprep.mubr.f32.mxu0 %v789_v60  ;;  %v2687_v60 = vld [vmem:[%s3210_s3 + $0xd8] sm:$0xff] }
 0x2e0   :  { %v790_v3 = vmax.f32 %v779_v27, 0.0  ;;  %v781_v25 = vpop.f32.mrb[31].mxu1  ;;  %867 = vmatmul.mubr.f32.gmra.mrb[12].mxu0 %v788_v51  ;;  %v451_v51 = vmul.f32 %v2479_v52, %v2671_v18 }
 0x2e1   :  { %476 = vadd.xlane.f32.xlu1 %v475_v20  ;;  %473 = vadd.xlane.f32.xlu0 %v472_v63  ;;  %v791_v5 = vmax.f32 %v781_v25, 0.0  ;;  %v547_v20 = vsel %vm468_vm1, %v454_v56, 0.0  ;;  %v455_v63 = vmul.f32 %v2479_v52, %v2687_v60  ;;  %v2708_v25 = vld [vmem:[%s3210_s3 + $0x110] sm:$0xff] }
 0x2e2   :  { %v538_v27 = vsel %vm468_vm1, %v451_v51, 0.0  ;;  %v462_v36 = vmul.f32 %v2466_v14, %v2708_v25 }
 0x2e3   :  { %871 = vmatprep.mubr.f32.mxu0 %v791_v5  ;;  %v550_v5 = vsel %vm468_vm1, %v455_v63, 0.0 }
 0x2e4   :  { %872 = vmatmul.mubr.f32.gmra.mrb[14].mxu0 %v790_v3  ;;  %v2703_v3 = vld [vmem:[%s3210_s3 + $0xf8] sm:$0xff]  ;;  %v571_v17 = vsel %vm468_vm1, %v462_v36, 0.0 }
 0x2e5   :  { %479 = vadd.xlane.f32.xlu1 %v478_v6  ;;  %488 = vadd.xlane.f32.xlu0 %v487_v8  ;;  %v559_v6 = vsel %vm468_vm1, %v458_v2, 0.0  ;;  %v459_v8 = vmul.f32 %v2479_v52, %v2703_v3 }
 0x2e9   :  { %491 = vadd.xlane.f32.xlu1 %v490_v11  ;;  %500 = vadd.xlane.f32.xlu0 %v499_v12  ;;  %v2724_v11 = vld [vmem:[%s3210_s3 + $0x130] sm:$0xff]  ;;  %v562_v12 = vsel %vm468_vm1, %v459_v8, 0.0 }
 0x2ed   :  { %503 = vadd.xlane.f32.xlu1 %v502_v0  ;;  %512 = vadd.xlane.f32.xlu0 %v511_v22  ;;  %v466_v0 = vmul.f32 %v2466_v14, %v2724_v11  ;;  %v2735_v22 = vld [vmem:[%s3210_s3 + $0x138] sm:$0xff] }
 0x2ef   :  { %v583_v29 = vsel %vm468_vm1, %v466_v0, 0.0 }
 0x2f1   :  { %515 = vadd.xlane.f32.xlu1 %v514_v39  ;;  %524 = vadd.xlane.f32.xlu0 %v523_v40  ;;  %v467_v39 = vmul.f32 %v2479_v52, %v2735_v22 }
 0x2f3   :  { %v586_v40 = vsel %vm468_vm1, %v467_v39, 0.0 }
 0x2f5   :  { %527 = vadd.xlane.f32.xlu1 %v526_v16  ;;  %536 = vadd.xlane.f32.xlu0 %v535_v47 }
 0x2f9   :  { %539 = vadd.xlane.f32.xlu1 %v538_v27  ;;  %548 = vadd.xlane.f32.xlu0 %v547_v20 }
 0x2fd   :  { %551 = vadd.xlane.f32.xlu1 %v550_v5  ;;  %560 = vadd.xlane.f32.xlu0 %v559_v6 }
 0x301   :  { %563 = vadd.xlane.f32.xlu1 %v562_v12  ;;  %572 = vadd.xlane.f32.xlu0 %v571_v17 }
 0x305   :  { %575 = vadd.xlane.f32.xlu1 %v574_v28  ;;  %584 = vadd.xlane.f32.xlu0 %v583_v29 }
 0x309   :  { %587 = vadd.xlane.f32.xlu1 %v586_v40 }
 0x346   :  { %v471_v14 = vpop.xlane.xlu0 %470 }
 0x347   :  { %1118 = vperm.xlu0 %2068, %v471_v14  }
 0x34a   :  { %v486_v44 = vpop.xlane.xlu1 %485  ;;  %v483_v45 = vpop.xlane.xlu0 %482 }
 0x34b   :  { %1130 = vperm.xlu1 %2069, %v483_v45  }
 0x34e   :  { %v498_v16 = vpop.xlane.xlu1 %497  ;;  %v495_v47 = vpop.xlane.xlu0 %494 }
 0x34f   :  { %1145 = vperm.xlu0 %2068, %v498_v16   ;;  %1142 = vperm.xlu1 %2069, %v495_v47  }
 0x352   :  { %v510_v51 = vpop.xlane.xlu1 %509  ;;  %v507_v56 = vpop.xlane.xlu0 %506 }
 0x353   :  { %1157 = vperm.xlu0 %2068, %v510_v51   ;;  %1154 = vperm.xlu1 %2069, %v507_v56  }
 0x356   :  { %v522_v27 = vpop.xlane.xlu1 %521  ;;  %v519_v52 = vpop.xlane.xlu0 %518 }
 0x357   :  { %1169 = vperm.xlu0 %2068, %v522_v27   ;;  %1166 = vperm.xlu1 %2069, %v519_v52  }
 0x35a   :  { %v534_v20 = vpop.xlane.xlu1 %533  ;;  %v531_v63 = vpop.xlane.xlu0 %530 }
 0x35b   :  { %1181 = vperm.xlu0 %2068, %v534_v20   ;;  %1178 = vperm.xlu1 %2069, %v531_v63  }
 0x35e   :  { %v546_v2 = vpop.xlane.xlu1 %545  ;;  %v543_v5 = vpop.xlane.xlu0 %542 }
 0x35f   :  { %1193 = vperm.xlu0 %2068, %v546_v2   ;;  %1190 = vperm.xlu1 %2069, %v543_v5  }
 0x362   :  { %v558_v6 = vpop.xlane.xlu1 %557  ;;  %v555_v8 = vpop.xlane.xlu0 %554 }
 0x363   :  { %1205 = vperm.xlu0 %2068, %v558_v6   ;;  %1202 = vperm.xlu1 %2069, %v555_v8  }
 0x366   :  { %v570_v36 = vpop.xlane.xlu1 %569  ;;  %v567_v12 = vpop.xlane.xlu0 %566 }
 0x367   :  { %1217 = vperm.xlu0 %2068, %v570_v36   ;;  %1214 = vperm.xlu1 %2069, %v567_v12  }
 0x36a   :  { %v582_v17 = vpop.xlane.xlu1 %581  ;;  %v579_v48 = vpop.xlane.xlu0 %578 }
 0x36b   :  { %1229 = vperm.xlu0 %2068, %v582_v17   ;;  %1226 = vperm.xlu1 %2069, %v579_v48  }
 0x36e   :  { %v477_v0 = vpop.xlane.xlu1 %476  ;;  %v474_v28 = vpop.xlane.xlu0 %473 }
 0x36f   :  { %1121 = vperm.xlu1 %2069, %v474_v28  }
 0x372   :  { %v480_v29 = vpop.xlane.xlu1 %479  ;;  %v489_v39 = vpop.xlane.xlu0 %488 }
 0x373   :  { %1133 = vperm.xlu1 %2069, %v486_v44  }
 0x376   :  { %v492_v40 = vpop.xlane.xlu1 %491  ;;  %v501_v14 = vpop.xlane.xlu0 %500 }
 0x377   :  { %1124 = vperm.xlu1 %2069, %v477_v0  }
 0x37a   :  { %v504_v45 = vpop.xlane.xlu1 %503  ;;  %v513_v16 = vpop.xlane.xlu0 %512 }
 0x37b   :  { %1136 = vperm.xlu1 %2069, %v489_v39  }
 0x37e   :  { %v516_v47 = vpop.xlane.xlu1 %515  ;;  %v525_v51 = vpop.xlane.xlu0 %524 }
 0x37f   :  { %1148 = vperm.xlu1 %2069, %v501_v14  }
 0x382   :  { %v537_v56 = vpop.xlane.xlu0 %536  ;;  %v528_v27 = vpop.xlane.xlu1 %527 }
 0x383   :  { %1160 = vperm.xlu1 %2069, %v513_v16  }
 0x386   :  { %v549_v52 = vpop.xlane.xlu0 %548  ;;  %v540_v20 = vpop.xlane.xlu1 %539 }
 0x387   :  { %1172 = vperm.xlu1 %2069, %v525_v51  }
 0x38a   :  { %v561_v63 = vpop.xlane.xlu0 %560  ;;  %v552_v44 = vpop.xlane.xlu1 %551 }
 0x38b   :  { %1184 = vperm.xlu1 %2069, %v537_v56  }
 0x38e   :  { %v573_v2 = vpop.xlane.xlu0 %572  ;;  %v564_v6 = vpop.xlane.xlu1 %563 }
 0x38f   :  { %1196 = vperm.xlu1 %2069, %v549_v52  }
 0x392   :  { %v585_v5 = vpop.xlane.xlu0 %584  ;;  %v576_v8 = vpop.xlane.xlu1 %575 }
 0x393   :  { %1208 = vperm.xlu1 %2069, %v561_v63   ;;  %1232 = vperm.xlu0 %2068, %v585_v5  }
 0x396   :  { %v588_v36 = vpop.xlane.xlu1 %587 }
 0x397   :  { %1220 = vperm.xlu1 %2069, %v573_v2   ;;  %1151 = vperm.xlu0 %2068, %v504_v45  }
 0x39b   :  { %1127 = vperm.xlu1 %2069, %v480_v29   ;;  %1163 = vperm.xlu0 %2068, %v516_v47  }
 0x39f   :  { %1139 = vperm.xlu1 %2069, %v492_v40   ;;  %1175 = vperm.xlu0 %2068, %v528_v27  }
 0x3a3   :  { %1235 = vperm.xlu1 %2069, %v588_v36   ;;  %1187 = vperm.xlu0 %2068, %v540_v20  }
 0x3a7   :  { %1199 = vperm.xlu0 %2068, %v552_v44  }
 0x3ab   :  { %1211 = vperm.xlu0 %2068, %v564_v6   ;;  %v1954_v12 = vpop.f32.mrb[8].mxu0 }
 0x3ac   :  { %v1955_v17 = vpop.f32.mrb[9].mxu0 }
 0x3ad   :  { %v2742_v48 = vadd.f32 %v1955_v17, %v1954_v12 }
 0x3af   :  { %1223 = vperm.xlu0 %2068, %v576_v8   ;;  %v1957_v0 = vpop.f32.mrb[10].mxu0  ;;  %v877_v63 = vmul.f32 %v2742_v48, %v2417_v58  ;;  %v885_v36 = vmul.f32 %v2742_v48, %v2446_v32 }
 0x3b0   :  { %v1958_v28 = vpop.f32.mrb[11].mxu0 }
 0x3b1   :  { %v2744_v39 = vadd.f32 %v1958_v28, %v1957_v0  ;;  %v917_v5 = vsel %vm468_vm1, %v877_v63, 0.0  ;;  %v941_v17 = vsel %vm468_vm1, %v885_v36, 0.0  ;;  %v889_v0 = vmul.f32 %v2742_v48, %v2464_v13 }
 0x3b3   :  { %v1960_v14 = vpop.f32.mrb[12].mxu0  ;;  %v878_v51 = vmul.f32 %v2744_v39, %v2580_v41  ;;  %v882_v27 = vmul.f32 %v2744_v39, %v2431_v23  ;;  %v886_v20 = vmul.f32 %v2744_v39, %v2436_v26  ;;  %v890_v41 = vmul.f32 %v2744_v39, %v2455_v38 }
 0x3b4   :  { %v1961_v29 = vpop.f32.mrb[13].mxu0  ;;  %v881_v23 = vmul.f32 %v2742_v48, %v2424_v19  ;;  %v894_v58 = vmul.f32 %v2744_v39, %v2474_v46  ;;  %v898_v12 = vmul.f32 %v2744_v39, %v2492_v59  ;;  %v902_v28 = vmul.f32 %v2744_v39, %v2508_v1 }
 0x3b5   :  { %v2746_v45 = vadd.f32 %v1961_v29, %v1960_v14  ;;  %v920_v56 = vsel %vm468_vm1, %v878_v51, 0.0  ;;  %v932_v52 = vsel %vm468_vm1, %v882_v27, 0.0  ;;  %v944_v44 = vsel %vm468_vm1, %v886_v20, 0.0 }
 0x3b6   :  { %v956_v26 = vsel %vm468_vm1, %v890_v41, 0.0  ;;  %v929_v8 = vsel %vm468_vm1, %v881_v23, 0.0  ;;  %v968_v19 = vsel %vm468_vm1, %v894_v58, 0.0  ;;  %v980_v32 = vsel %vm468_vm1, %v898_v12, 0.0 }
 0x3b7   :  { %v1963_v40 = vpop.f32.mrb[14].mxu0  ;;  %v953_v14 = vsel %vm468_vm1, %v889_v0, 0.0  ;;  %v893_v29 = vmul.f32 %v2742_v48, %v2484_v53  ;;  %v992_v13 = vsel %vm468_vm1, %v902_v28, 0.0  ;;  %v897_v51 = vmul.f32 %v2742_v48, %v2500_v62 }
 0x3b8   :  { %v1964_v16 = vpop.f32.mrb[15].mxu0  ;;  %v910_v27 = vmul.f32 %v2744_v39, %v2543_v42  ;;  %v905_v41 = vmul.f32 %v2742_v48, %v2532_v7  ;;  %v914_v42 = vmul.f32 %v2744_v39, %v2559_v49 }
 0x3b9   :  { %v2748_v47 = vadd.f32 %v1964_v16, %v1963_v40  ;;  %v906_v40 = vmul.f32 %v2744_v39, %v2524_v30  ;;  %v965_v16 = vsel %vm468_vm1, %v893_v29, 0.0  ;;  %v901_v30 = vmul.f32 %v2742_v48, %v2516_v24 }
 0x3ba   :  { %v1016_v63 = vsel %vm468_vm1, %v910_v27, 0.0  ;;  %v1001_v23 = vsel %vm468_vm1, %v905_v41, 0.0  ;;  %v1028_v7 = vsel %vm468_vm1, %v914_v42, 0.0  ;;  %v913_v39 = vmul.f32 %v2742_v48, %v2564_v21 }
 0x3bb   :  { %v1004_v53 = vsel %vm468_vm1, %v906_v40, 0.0  ;;  %v880_v24 = vmul.f32 %v2748_v47, %v2596_v57  ;;  %v884_v49 = vmul.f32 %v2748_v47, %v2607_v4  ;;  %v879_v4 = vmul.f32 %v2746_v45, %v2575_v35 }
 0x3bc   :  { %v1025_v0 = vsel %vm468_vm1, %v913_v39, 0.0  ;;  %v908_v42 = vmul.f32 %v2748_v47, %v2703_v3  ;;  %v903_v3 = vmul.f32 %v2746_v45, %v2676_v15  ;;  %v916_v15 = vmul.f32 %v2748_v47, %v2735_v22 }
 0x3bd   :  { %v926_v36 = vsel %vm468_vm1, %v880_v24, 0.0  ;;  %v938_v12 = vsel %vm468_vm1, %v884_v49, 0.0  ;;  %v923_v28 = vsel %vm468_vm1, %v879_v4, 0.0  ;;  %v1357_v49 = vlaneseq }
 0x3be   :  { %v995_v39 = vsel %vm468_vm1, %v903_v3, 0.0  ;;  %v915_v22 = vmul.f32 %v2746_v45, %v2724_v11 }
 0x3c7   :  { %921 = vadd.xlane.f32.xlu1 %v920_v56  ;;  %v2802_v56 = vpop.permute.xlu0 %1118 }
 0x3ca   :  { %v2760_v2 = vpop.permute.xlu1 %1130 }
 0x3cb   :  { %933 = vadd.xlane.f32.xlu1 %v932_v52  ;;  %v977_v52 = vsel %vm468_vm1, %v897_v51, 0.0 }
 0x3ce   :  { %v2768_v6 = vpop.permute.xlu1 %1142  ;;  %918 = vadd.xlane.f32.xlu0 %v917_v5  ;;  %v2812_v62 = vpop.permute.xlu0 %1145 }
 0x3cf   :  { %945 = vadd.xlane.f32.xlu1 %v944_v44  ;;  %v989_v44 = vsel %vm468_vm1, %v901_v30, 0.0  ;;  %v904_v30 = vmul.f32 %v2748_v47, %v2687_v60  ;;  %v899_v60 = vmul.f32 %v2746_v45, %v2660_v34 }
 0x3d2   :  { %v2776_v38 = vpop.permute.xlu1 %1154  ;;  %930 = vadd.xlane.f32.xlu0 %v929_v8  ;;  %v2827_v58 = vpop.permute.xlu0 %1157 }
 0x3d3   :  { %957 = vadd.xlane.f32.xlu1 %v956_v26  ;;  %v909_v26 = vmul.f32 %v2742_v48, %v2548_v43  ;;  %v892_v48 = vmul.f32 %v2748_v47, %v2639_v54  ;;  %v887_v54 = vmul.f32 %v2746_v45, %v2612_v31 }
 0x3d5   :  { %v1013_v57 = vsel %vm468_vm1, %v909_v26, 0.0  ;;  %v962_v35 = vsel %vm468_vm1, %v892_v48, 0.0  ;;  %v947_v27 = vsel %vm468_vm1, %v887_v54, 0.0  ;;  %v1010_v26 = vsel %vm468_vm1, %v908_v42, 0.0 }
 0x3d6   :  { %v2784_v46 = vpop.permute.xlu1 %1166  ;;  %942 = vadd.xlane.f32.xlu0 %v941_v17  ;;  %v2840_v43 = vpop.permute.xlu0 %1169  ;;  %v888_v17 = vmul.f32 %v2748_v47, %v2623_v9  ;;  %v911_v48 = vmul.f32 %v2746_v45, %v2708_v25 }
 0x3d7   :  { %969 = vadd.xlane.f32.xlu1 %v968_v19 }
 0x3d8   :  { %v950_v21 = vsel %vm468_vm1, %v888_v17, 0.0  ;;  %v1358_v17 = vand.u32 127, %v1357_v49 }
 0x3da   :  { %v2792_v59 = vpop.permute.xlu1 %1178  ;;  %954 = vadd.xlane.f32.xlu0 %v953_v14  ;;  %v883_v14 = vmul.f32 %v2746_v45, %v2591_v50  ;;  %v2856_v9 = vpop.permute.xlu0 %1181  ;;  %v1363_v4 = vadd.s32 4294967288, %v1358_v17 }
 0x3db   :  { %981 = vadd.xlane.f32.xlu1 %v980_v32 }
 0x3dc   :  { %v935_v40 = vsel %vm468_vm1, %v883_v14, 0.0 }
 0x3de   :  { %v2800_v1 = vpop.permute.xlu1 %1190  ;;  %966 = vadd.xlane.f32.xlu0 %v965_v16  ;;  %v2868_v50 = vpop.permute.xlu0 %1193 }
 0x3df   :  { %993 = vadd.xlane.f32.xlu1 %v992_v13  ;;  %v896_v13 = vmul.f32 %v2748_v47, %v2655_v33  ;;  %v891_v33 = vmul.f32 %v2746_v45, %v2628_v10  ;;  %v998_v10 = vsel %vm468_vm1, %v904_v30, 0.0 }
 0x3e1   :  { %v974_v51 = vsel %vm468_vm1, %v896_v13, 0.0  ;;  %v1370_v13 = vadd.s32 4294967280, %v1358_v17 }
 0x3e2   :  { %v2810_v20 = vpop.permute.xlu1 %1202  ;;  %978 = vadd.xlane.f32.xlu0 %v977_v52 }
 0x3e3   :  { %1005 = vadd.xlane.f32.xlu1 %v1004_v53  ;;  %v900_v53 = vmul.f32 %v2748_v47, %v2671_v18  ;;  %v2884_v18 = vpop.permute.xlu0 %1205 }
 0x3e5   :  { %v986_v31 = vsel %vm468_vm1, %v900_v53, 0.0 }
 0x3e6   :  { %v2818_v5 = vpop.permute.xlu1 %1214  ;;  %990 = vadd.xlane.f32.xlu0 %v989_v44  ;;  %v895_v44 = vmul.f32 %v2746_v45, %v2644_v55 }
 0x3e7   :  { %1017 = vadd.xlane.f32.xlu1 %v1016_v63  ;;  %v959_v63 = vsel %vm468_vm1, %v891_v33, 0.0  ;;  %v2896_v55 = vpop.permute.xlu0 %1217 }
 0x3e8   :  { %v971_v24 = vsel %vm468_vm1, %v895_v44, 0.0 }
 0x3ea   :  { %v2829_v8 = vpop.permute.xlu1 %1226  ;;  %1002 = vadd.xlane.f32.xlu0 %v1001_v23 }
 0x3eb   :  { %1029 = vadd.xlane.f32.xlu1 %v1028_v7  ;;  %v912_v7 = vmul.f32 %v2748_v47, %v2719_v37  ;;  %v1019_v47 = vsel %vm468_vm1, %v911_v48, 0.0 }
 0x3ed   :  { %v1022_v34 = vsel %vm468_vm1, %v912_v7, 0.0 }
 0x3ee   :  { %v2838_v19 = vpop.permute.xlu1 %1121  ;;  %1014 = vadd.xlane.f32.xlu0 %v1013_v57 }
 0x3ef   :  { %927 = vadd.xlane.f32.xlu1 %v926_v36  ;;  %v983_v36 = vsel %vm468_vm1, %v899_v60, 0.0 }
 0x3f2   :  { %v2848_v32 = vpop.permute.xlu1 %1133  ;;  %1026 = vadd.xlane.f32.xlu0 %v1025_v0  ;;  %v2910_v0 = vpop.permute.xlu0 %1229 }
 0x3f3   :  { %939 = vadd.xlane.f32.xlu1 %v938_v12  ;;  %v907_v12 = vmul.f32 %v2746_v45, %v2692_v61  ;;  %v1031_v45 = vsel %vm468_vm1, %v915_v22, 0.0 }
 0x3f6   :  { %v2858_v29 = vpop.permute.xlu1 %1124  ;;  %924 = vadd.xlane.f32.xlu0 %v923_v28  ;;  %v1360_v28 = vshrl.u32 %v1357_v49, 7 }
 0x3f7   :  { %951 = vadd.xlane.f32.xlu1 %v950_v21  ;;  %v1007_v21 = vsel %vm468_vm1, %v907_v12, 0.0 }
 0x3f8   :  { %v2924_v54 = vsub.s32 %v1363_v4, %v1360_v28 }
 0x3fa   :  { %v2866_v16 = vpop.permute.xlu1 %1136  ;;  %936 = vadd.xlane.f32.xlu0 %v935_v40  ;;  %v1377_v40 = vadd.s32 4294967272, %v1358_v17  ;;  %v1410_v11 = vrot.slane %v2812_v62, %v2924_v54  ;;  %v1467_v62 = vrot.slane %v2856_v9, %v2924_v54  ;;  %v1367_v42 = vrot.slane %v2838_v19, %v2924_v54 }
 0x3fb   :  { %963 = vadd.xlane.f32.xlu1 %v962_v35  ;;  %v1034_v35 = vsel %vm468_vm1, %v916_v15, 0.0 }
 0x3fc   :  { %v2935_v33 = vsub.s32 %v1377_v40, %v1360_v28 }
 0x3fe   :  { %v2876_v52 = vpop.permute.xlu1 %1148  ;;  %948 = vadd.xlane.f32.xlu0 %v947_v27  ;;  %v2933_v27 = vsub.s32 %v1370_v13, %v1360_v28 }
 0x3ff   :  { %975 = vadd.xlane.f32.xlu1 %v974_v51  ;;  %v2929_v51 = vsub.s32 %v1358_v17, %v1360_v28  ;;  %v1486_v28 = vrot.slane %v2868_v50, %v2924_v54 }
 0x400   :  { %v1374_v19 = vrot.slane %v2858_v29, %v2933_v27  ;;  %v1396_v9 = vrot.slane %v2866_v16, %v2933_v27 }
 0x401   :  { %v1425_v30 = vrot.slane %v2776_v38, %v2929_v51  ;;  %v1444_v44 = vrot.slane %v2784_v46, %v2929_v51  ;;  %v1391_v46 = vrot.slane %v2848_v32, %v2924_v54  ;;  %v1415_v32 = vrot.slane %v2876_v52, %v2933_v27 }
 0x402   :  { %v2886_v41 = vpop.permute.xlu1 %1160  ;;  %960 = vadd.xlane.f32.xlu0 %v959_v63  ;;  %v1429_v63 = vrot.slane %v2827_v58, %v2924_v54  ;;  %v1362_v58 = vrot.slane %v2802_v56, %v2929_v51  ;;  %v1482_v4 = vrot.slane %v2800_v1, %v2929_v51 }
 0x403   :  { %987 = vadd.xlane.f32.xlu1 %v986_v31  ;;  %v1406_v31 = vrot.slane %v2768_v6, %v2929_v51  ;;  %v1463_v6 = vrot.slane %v2792_v59, %v2929_v51  ;;  %v1387_v59 = vrot.slane %v2760_v2, %v2929_v51 }
 0x404   :  { %v1430_v60 = vsel %vm1368_vm2, %v1429_v63, %v1425_v30  ;;  %v1369_v2 = vsel %vm1368_vm2, %v1367_v42, %v1362_v58  ;;  %v1487_v42 = vsel %vm1368_vm2, %v1486_v28, %v1482_v4 }
 0x405   :  { %v1468_v7 = vsel %vm1368_vm2, %v1467_v62, %v1463_v6  ;;  %v1392_v49 = vsel %vm1368_vm2, %v1391_v46, %v1387_v59  ;;  %v1376_v12 = vsel %vm1375_vm3, %v1374_v19, %v1369_v2  ;;  %v1524_v19 = vrot.slane %v2896_v55, %v2924_v54 }
 0x406   :  { %v2894_v23 = vpop.permute.xlu1 %1172  ;;  %972 = vadd.xlane.f32.xlu0 %v971_v24  ;;  %v1397_v17 = vsel %vm1375_vm3, %v1396_v9, %v1392_v49  ;;  %v1539_v9 = vrot.slane %v2829_v8, %v2929_v51 }
 0x407   :  { %999 = vadd.xlane.f32.xlu1 %v998_v10  ;;  %v1448_v10 = vrot.slane %v2840_v43, %v2924_v54  ;;  %v1411_v43 = vsel %vm1368_vm2, %v1410_v11, %v1406_v31 }
 0x409   :  { %v1449_v56 = vsel %vm1368_vm2, %v1448_v10, %v1444_v44  ;;  %v1501_v44 = vrot.slane %v2810_v20, %v2929_v51  ;;  %v1505_v10 = vrot.slane %v2884_v18, %v2924_v54  ;;  %v1520_v18 = vrot.slane %v2818_v5, %v2929_v51 }
 0x40a   :  { %v2904_v57 = vpop.permute.xlu1 %1184  ;;  %984 = vadd.xlane.f32.xlu0 %v983_v36  ;;  %v1434_v36 = vrot.slane %v2886_v41, %v2933_v27 }
 0x40b   :  { %1011 = vadd.xlane.f32.xlu1 %v1010_v26  ;;  %v1472_v41 = vrot.slane %v2904_v57, %v2933_v27  ;;  %v1506_v20 = vsel %vm1368_vm2, %v1505_v10, %v1501_v44 }
 0x40d   :  { %v1473_v31 = vsel %vm1375_vm3, %v1472_v41, %v1468_v7 }
 0x40e   :  { %v2912_v37 = vpop.permute.xlu1 %1196  ;;  %996 = vadd.xlane.f32.xlu0 %v995_v39 }
 0x40f   :  { %1023 = vadd.xlane.f32.xlu1 %v1022_v34  ;;  %v1453_v34 = vrot.slane %v2894_v23, %v2933_v27  ;;  %v1491_v50 = vrot.slane %v2912_v37, %v2933_v27 }
 0x411   :  { %v1454_v22 = vsel %vm1375_vm3, %v1453_v34, %v1449_v56 }
 0x412   :  { %v2919_v14 = vpop.permute.xlu1 %1208  ;;  %1008 = vadd.xlane.f32.xlu0 %v1007_v21  ;;  %v2921_v61 = vpop.permute.xlu0 %1232  ;;  %v1416_v21 = vsel %vm1375_vm3, %v1415_v32, %v1411_v43 }
 0x413   :  { %1035 = vadd.xlane.f32.xlu1 %v1034_v35  ;;  %v1435_v35 = vsel %vm1375_vm3, %v1434_v36, %v1430_v60  ;;  %v1548_v5 = vrot.slane %v2921_v61, %v2933_v27 }
 0x416   :  { %v2931_v25 = vpop.permute.xlu1 %1220  ;;  %1020 = vadd.xlane.f32.xlu0 %v1019_v47  ;;  %v1152_v53 = vpop.permute.xlu0 %1151 }
 0x417   :  { %v1420_v29 = vrot.slane %v1152_v53, %v2935_v33  ;;  %v1529_v32 = vrot.slane %v2931_v25, %v2933_v27 }
 0x419   :  { %v1421_v13 = vsel %vm1382_vm4, %v1420_v29, %v1416_v21 }
 0x41a   :  { %v1128_v24 = vpop.permute.xlu1 %1127  ;;  %1032 = vadd.xlane.f32.xlu0 %v1031_v45  ;;  %v1164_v38 = vpop.permute.xlu0 %1163 }
 0x41b   :  { %v1381_v26 = vrot.slane %v1128_v24, %v2935_v33  ;;  %v1439_v52 = vrot.slane %v1164_v38, %v2935_v33  ;;  %v1492_v24 = vsel %vm1375_vm3, %v1491_v50, %v1487_v42  ;;  %v1510_v38 = vrot.slane %v2919_v14, %v2933_v27 }
 0x41c   :  { %v1543_v14 = vrot.slane %v2910_v0, %v2924_v54  ;;  %v1525_v0 = vsel %vm1368_vm2, %v1524_v19, %v1520_v18 }
 0x41d   :  { %v1383_v23 = vsel %vm1382_vm4, %v1381_v26, %v1376_v12  ;;  %v1440_v1 = vsel %vm1382_vm4, %v1439_v52, %v1435_v35  ;;  %v1511_v56 = vsel %vm1375_vm3, %v1510_v38, %v1506_v20  ;;  %v1530_v61 = vsel %vm1375_vm3, %v1529_v32, %v1525_v0 }
 0x41e   :  { %v1140_v3 = vpop.permute.xlu1 %1139  ;;  %v1176_v16 = vpop.permute.xlu0 %1175  ;;  %v1544_v2 = vsel %vm1368_vm2, %v1543_v14, %v1539_v9 }
 0x41f   :  { %v1401_v39 = vrot.slane %v1140_v3, %v2935_v33  ;;  %v1458_v15 = vrot.slane %v1176_v16, %v2935_v33  ;;  %v1549_v29 = vsel %vm1375_vm3, %v1548_v5, %v1544_v2 }
 0x421   :  { %v1402_v48 = vsel %vm1382_vm4, %v1401_v39, %v1397_v17  ;;  %v1459_v45 = vsel %vm1382_vm4, %v1458_v15, %v1454_v22 }
 0x422   :  { %v1746_v57 = vsel %vm1745_vm5, %v1402_v48, %v1383_v23  ;;  %v1188_v40 = vpop.permute.xlu0 %1187  ;;  %v1236_v46 = vpop.permute.xlu1 %1235 }
 0x423   :  { %v1748_v47 = vsel %vm1747_vm6, %v1421_v13, %v1746_v57  ;;  %v1477_v53 = vrot.slane %v1188_v40, %v2935_v33  ;;  %v1553_v26 = vrot.slane %v1236_v46, %v2935_v33 }
 0x424   :  { %v1750_v11 = vsel %vm1749_vm7, %v1440_v1, %v1748_v47 }
 0x425   :  { %v1752_v30 = vsel %vm1751_vm8, %v1459_v45, %v1750_v11  ;;  %v1478_v63 = vsel %vm1382_vm4, %v1477_v53, %v1473_v31  ;;  %v1554_v3 = vsel %vm1382_vm4, %v1553_v26, %v1549_v29 }
 0x426   :  { %v1200_v6 = vpop.permute.xlu0 %1199  ;;  %v1754_v62 = vsel %vm1753_vm9, %v1478_v63, %v1752_v30 }
 0x427   :  { %v1496_v37 = vrot.slane %v1200_v6, %v2935_v33 }
 0x429   :  { %v1497_v58 = vsel %vm1382_vm4, %v1496_v37, %v1492_v24 }
 0x42a   :  { %v1212_v59 = vpop.permute.xlu0 %1211  ;;  %v1756_v43 = vsel %vm1755_vm10, %v1497_v58, %v1754_v62 }
 0x42b   :  { %v1515_v60 = vrot.slane %v1212_v59, %v2935_v33 }
 0x42d   :  { %v1516_v55 = vsel %vm1382_vm4, %v1515_v60, %v1511_v56 }
 0x42e   :  { %v1224_v7 = vpop.permute.xlu0 %1223  ;;  %v3038_v8 = vsel %vm1757_vm11, %v1516_v55, %v1756_v43 }
 0x42f   :  { %v1534_v36 = vrot.slane %v1224_v7, %v2935_v33  ;;  %v1772_v43 = vsel %vm124_vm0, %v3038_v8, 0.0 }
 0x431   :  { %v1535_v25 = vsel %vm1382_vm4, %v1534_v36, %v1530_v61 }
 0x432   :  { %v3048_v16 = vsel %vm1745_vm5, %v1554_v3, %v1535_v25 }
 0x433   :  { %v1776_v14 = vsel %vm1775_vm12, %v3048_v16, 0.0 }
 0x454   :  { %v922_v49 = vpop.xlane.xlu1 %921 }
 0x458   :  { %v934_v34 = vpop.xlane.xlu1 %933 }
 0x45b   :  { %v919_v52 = vpop.xlane.xlu0 %918 }
 0x45c   :  { %1238 = vperm.xlu1 %2069, %v919_v52   ;;  %v946_v39 = vpop.xlane.xlu1 %945 }
 0x45f   :  { %v931_v12 = vpop.xlane.xlu0 %930 }
 0x460   :  { %1250 = vperm.xlu1 %2069, %v931_v12   ;;  %v958_v17 = vpop.xlane.xlu1 %957 }
 0x463   :  { %v943_v41 = vpop.xlane.xlu0 %942 }
 0x464   :  { %1262 = vperm.xlu1 %2069, %v943_v41   ;;  %v970_v15 = vpop.xlane.xlu1 %969 }
 0x467   :  { %v955_v4 = vpop.xlane.xlu0 %954 }
 0x468   :  { %1277 = vperm.xlu1 %2069, %v958_v17   ;;  %1274 = vperm.xlu0 %2068, %v955_v4   ;;  %v982_v21 = vpop.xlane.xlu1 %981 }
 0x46b   :  { %v967_v23 = vpop.xlane.xlu0 %966 }
 0x46c   :  { %1289 = vperm.xlu1 %2069, %v970_v15   ;;  %1286 = vperm.xlu0 %2068, %v967_v23   ;;  %v994_v48 = vpop.xlane.xlu1 %993 }
 0x46f   :  { %v979_v28 = vpop.xlane.xlu0 %978 }
 0x470   :  { %1301 = vperm.xlu1 %2069, %v982_v21   ;;  %1298 = vperm.xlu0 %2068, %v979_v28   ;;  %v1006_v35 = vpop.xlane.xlu1 %1005 }
 0x473   :  { %v991_v13 = vpop.xlane.xlu0 %990 }
 0x474   :  { %1313 = vperm.xlu1 %2069, %v994_v48   ;;  %1310 = vperm.xlu0 %2068, %v991_v13   ;;  %v1018_v57 = vpop.xlane.xlu1 %1017 }
 0x477   :  { %v1003_v40 = vpop.xlane.xlu0 %1002 }
 0x478   :  { %1325 = vperm.xlu1 %2069, %v1006_v35   ;;  %1322 = vperm.xlu0 %2068, %v1003_v40   ;;  %v1030_v22 = vpop.xlane.xlu1 %1029 }
 0x47b   :  { %v1015_v1 = vpop.xlane.xlu0 %1014 }
 0x47c   :  { %1337 = vperm.xlu1 %2069, %v1018_v57   ;;  %1334 = vperm.xlu0 %2068, %v1015_v1   ;;  %v928_v47 = vpop.xlane.xlu1 %927 }
 0x47f   :  { %v1027_v53 = vpop.xlane.xlu0 %1026 }
 0x480   :  { %1349 = vperm.xlu1 %2069, %v1030_v22   ;;  %1346 = vperm.xlu0 %2068, %v1027_v53   ;;  %v940_v50 = vpop.xlane.xlu1 %939 }
 0x483   :  { %v925_v31 = vpop.xlane.xlu0 %924 }
 0x484   :  { %1241 = vperm.xlu0 %2068, %v922_v49   ;;  %1244 = vperm.xlu1 %2069, %v925_v31   ;;  %v952_v45 = vpop.xlane.xlu1 %951 }
 0x487   :  { %v937_v11 = vpop.xlane.xlu0 %936 }
 0x488   :  { %1253 = vperm.xlu0 %2068, %v934_v34   ;;  %v964_v44 = vpop.xlane.xlu1 %963 }
 0x48b   :  { %v949_v30 = vpop.xlane.xlu0 %948 }
 0x48c   :  { %1265 = vperm.xlu0 %2068, %v946_v39   ;;  %1268 = vperm.xlu1 %2069, %v949_v30   ;;  %v976_v6 = vpop.xlane.xlu1 %975 }
 0x48f   :  { %v961_v63 = vpop.xlane.xlu0 %960 }
 0x490   :  { %1256 = vperm.xlu0 %2068, %v937_v11   ;;  %1280 = vperm.xlu1 %2069, %v961_v63   ;;  %v988_v37 = vpop.xlane.xlu1 %987 }
 0x493   :  { %v973_v10 = vpop.xlane.xlu0 %972 }
 0x494   :  { %1292 = vperm.xlu1 %2069, %v973_v10   ;;  %v1000_v38 = vpop.xlane.xlu1 %999 }
 0x497   :  { %v985_v62 = vpop.xlane.xlu0 %984 }
 0x498   :  { %1304 = vperm.xlu1 %2069, %v985_v62   ;;  %v1012_v18 = vpop.xlane.xlu1 %1011 }
 0x49b   :  { %v997_v42 = vpop.xlane.xlu0 %996 }
 0x49c   :  { %1316 = vperm.xlu1 %2069, %v997_v42   ;;  %v1024_v46 = vpop.xlane.xlu1 %1023 }
 0x49f   :  { %v1009_v24 = vpop.xlane.xlu0 %1008 }
 0x4a0   :  { %1328 = vperm.xlu0 %2068, %v1009_v24   ;;  %v1036_v59 = vpop.xlane.xlu1 %1035 }
 0x4a3   :  { %v1021_v58 = vpop.xlane.xlu0 %1020 }
 0x4a4   :  { %1340 = vperm.xlu1 %2069, %v1021_v58  }
 0x4a7   :  { %v1033_v20 = vpop.xlane.xlu0 %1032 }
 0x4a8   :  { %1247 = vperm.xlu1 %2069, %v928_v47   ;;  %1352 = vperm.xlu0 %2068, %v1033_v20  }
 0x4ac   :  { %1319 = vperm.xlu1 %2069, %v1000_v38   ;;  %1259 = vperm.xlu0 %2068, %v940_v50  }
 0x4b0   :  { %1343 = vperm.xlu1 %2069, %v1024_v46   ;;  %1271 = vperm.xlu0 %2068, %v952_v45  }
 0x4b4   :  { %1283 = vperm.xlu0 %2068, %v964_v44  }
 0x4b8   :  { %1295 = vperm.xlu0 %2068, %v976_v6  }
 0x4bc   :  { %1307 = vperm.xlu0 %2068, %v988_v37  }
 0x4c0   :  { %1331 = vperm.xlu0 %2068, %v1012_v18  }
 0x4c4   :  { %1355 = vperm.xlu0 %2068, %v1036_v59  }
 0x4d4   :  { %1773 = vadd.xlane.f32.xlu1 %v1772_v43 }
 0x4db   :  { %v1239_v19 = vpop.permute.xlu1 %1238 }
 0x4dc   :  { %v1558_v47 = vrot.slane %v1239_v19, %v2929_v51 }
 0x4df   :  { %v1251_v9 = vpop.permute.xlu1 %1250 }
 0x4e0   :  { %v1577_v53 = vrot.slane %v1251_v9, %v2929_v51 }
 0x4e3   :  { %v1263_v60 = vpop.permute.xlu1 %1262  ;;  %1777 = vadd.xlane.f32.xlu0 %v1776_v14 }
 0x4e4   :  { %v1596_v40 = vrot.slane %v1263_v60, %v2929_v51 }
 0x4e7   :  { %v1278_v56 = vpop.permute.xlu1 %1277  ;;  %v1275_v5 = vpop.permute.xlu0 %1274 }
 0x4e8   :  { %v1619_v11 = vrot.slane %v1278_v56, %v2924_v54  ;;  %v1615_v45 = vrot.slane %v1275_v5, %v2929_v51 }
 0x4ea   :  { %v1620_v59 = vsel %vm1368_vm2, %v1619_v11, %v1615_v45 }
 0x4eb   :  { %v3054_v32 = vpop.permute.xlu1 %1289  ;;  %v3056_v26 = vpop.permute.xlu0 %1286 }
 0x4ec   :  { %v1638_v9 = vrot.slane %v3054_v32, %v2924_v54  ;;  %v1634_v14 = vrot.slane %v3056_v26, %v2929_v51 }
 0x4ef   :  { %v3058_v55 = vpop.permute.xlu1 %1301  ;;  %v3060_v7 = vpop.permute.xlu0 %1298 }
 0x4f0   :  { %v1653_v32 = vrot.slane %v3060_v7, %v2929_v51 }
 0x4f3   :  { %v3062_v8 = vpop.permute.xlu1 %1313  ;;  %v3064_v0 = vpop.permute.xlu0 %1310 }
 0x4f7   :  { %v3066_v2 = vpop.permute.xlu1 %1325  ;;  %v3068_v36 = vpop.permute.xlu0 %1322 }
 0x4f8   :  { %v1691_v7 = vrot.slane %v3068_v36, %v2929_v51 }
 0x4fb   :  { %v3070_v29 = vpop.permute.xlu1 %1337  ;;  %v3072_v61 = vpop.permute.xlu0 %1334 }
 0x4ff   :  { %v3074_v25 = vpop.permute.xlu1 %1349  ;;  %v3076_v3 = vpop.permute.xlu0 %1346 }
 0x503   :  { %v1245_v16 = vpop.permute.xlu1 %1244  ;;  %v1242_v34 = vpop.permute.xlu0 %1241 }
 0x504   :  { %v1562_v13 = vrot.slane %v1242_v34, %v2924_v54  ;;  %v1567_v30 = vrot.slane %v1245_v16, %v2933_v27 }
 0x506   :  { %v1563_v10 = vsel %vm1368_vm2, %v1562_v13, %v1558_v47 }
 0x507   :  { %v1254_v39 = vpop.permute.xlu0 %1253  ;;  %v1568_v20 = vsel %vm1375_vm3, %v1567_v30, %v1563_v10  ;;  %v1733_v30 = vrot.slane %v3074_v25, %v2924_v54 }
 0x508   :  { %v1581_v57 = vrot.slane %v1254_v39, %v2924_v54  ;;  %v1657_v39 = vrot.slane %v3058_v55, %v2924_v54  ;;  %v1695_v55 = vrot.slane %v3066_v2, %v2924_v54 }
 0x50a   :  { %v1582_v6 = vsel %vm1368_vm2, %v1581_v57, %v1577_v53 }
 0x50b   :  { %v1269_v49 = vpop.permute.xlu1 %1268  ;;  %v1266_v17 = vpop.permute.xlu0 %1265 }
 0x50c   :  { %v1600_v28 = vrot.slane %v1266_v17, %v2924_v54  ;;  %v1605_v31 = vrot.slane %v1269_v49, %v2933_v27  ;;  %v1639_v17 = vsel %vm1368_vm2, %v1638_v9, %v1634_v14 }
 0x50e   :  { %v1601_v63 = vsel %vm1368_vm2, %v1600_v28, %v1596_v40  ;;  %v1676_v28 = vrot.slane %v3062_v8, %v2924_v54 }
 0x50f   :  { %v1281_v52 = vpop.permute.xlu1 %1280  ;;  %v1257_v15 = vpop.permute.xlu0 %1256  ;;  %v1606_v58 = vsel %vm1375_vm3, %v1605_v31, %v1601_v63  ;;  %v1696_v31 = vsel %vm1368_vm2, %v1695_v55, %v1691_v7  ;;  %v1729_v63 = vrot.slane %v3076_v3, %v2929_v51 }
 0x510   :  { %v1586_v22 = vrot.slane %v1257_v15, %v2933_v27  ;;  %v1624_v37 = vrot.slane %v1281_v52, %v2933_v27 }
 0x512   :  { %v1587_v24 = vsel %vm1375_vm3, %v1586_v22, %v1582_v6  ;;  %v1625_v60 = vsel %vm1375_vm3, %v1624_v37, %v1620_v59 }
 0x513   :  { %v1293_v12 = vpop.permute.xlu1 %1292 }
 0x514   :  { %v1643_v5 = vrot.slane %v1293_v12, %v2933_v27 }
 0x516   :  { %v1644_v13 = vsel %vm1375_vm3, %v1643_v5, %v1639_v17 }
 0x517   :  { %v3078_v41 = vpop.permute.xlu1 %1304 }
 0x518   :  { %v1662_v12 = vrot.slane %v3078_v41, %v2933_v27  ;;  %v1658_v41 = vsel %vm1368_vm2, %v1657_v39, %v1653_v32 }
 0x51b   :  { %v3080_v4 = vpop.permute.xlu1 %1316 }
 0x51c   :  { %v1681_v22 = vrot.slane %v3080_v4, %v2933_v27  ;;  %v1714_v4 = vrot.slane %v3070_v29, %v2924_v54 }
 0x51f   :  { %v3082_v21 = vpop.permute.xlu0 %1328 }
 0x523   :  { %v3084_v23 = vpop.permute.xlu1 %1340 }
 0x524   :  { %v1719_v29 = vrot.slane %v3084_v23, %v2933_v27 }
 0x527   :  { %v3086_v48 = vpop.permute.xlu0 %1352  ;;  %v1248_v1 = vpop.permute.xlu1 %1247 }
 0x528   :  { %v1572_v62 = vrot.slane %v1248_v1, %v2935_v33  ;;  %v1700_v1 = vrot.slane %v3082_v21, %v2933_v27 }
 0x52a   :  { %v1573_v43 = vsel %vm1382_vm4, %v1572_v62, %v1568_v20  ;;  %v1701_v6 = vsel %vm1375_vm3, %v1700_v1, %v1696_v31 }
 0x52b   :  { %v1260_v35 = vpop.permute.xlu0 %1259  ;;  %v1320_v15 = vpop.permute.xlu1 %1319 }
 0x52c   :  { %v1591_v50 = vrot.slane %v1260_v35, %v2935_v33  ;;  %v1672_v35 = vrot.slane %v3064_v0, %v2929_v51  ;;  %v1663_v0 = vsel %vm1375_vm3, %v1662_v12, %v1658_v41  ;;  %v1686_v2 = vrot.slane %v1320_v15, %v2935_v33 }
 0x52e   :  { %v1592_v38 = vsel %vm1382_vm4, %v1591_v50, %v1587_v24  ;;  %v1677_v47 = vsel %vm1368_vm2, %v1676_v28, %v1672_v35  ;;  %v1710_v50 = vrot.slane %v3072_v61, %v2929_v51  ;;  %v1738_v61 = vrot.slane %v3086_v48, %v2933_v27 }
 0x52f   :  { %v1272_v44 = vpop.permute.xlu0 %1271  ;;  %v1760_v56 = vsel %vm1745_vm5, %v1592_v38, %v1573_v43  ;;  %v1344_v11 = vpop.permute.xlu1 %1343 }
 0x530   :  { %v1610_v42 = vrot.slane %v1272_v44, %v2935_v33  ;;  %v1682_v44 = vsel %vm1375_vm3, %v1681_v22, %v1677_v47  ;;  %v1715_v38 = vsel %vm1368_vm2, %v1714_v4, %v1710_v50 }
 0x531   :  { %v1687_v62 = vsel %vm1382_vm4, %v1686_v2, %v1682_v44  ;;  %v1720_v27 = vsel %vm1375_vm3, %v1719_v29, %v1715_v38 }
 0x532   :  { %v1611_v18 = vsel %vm1382_vm4, %v1610_v42, %v1606_v58  ;;  %v1724_v42 = vrot.slane %v1344_v11, %v2935_v33  ;;  %v1734_v58 = vsel %vm1368_vm2, %v1733_v30, %v1729_v63 }
 0x533   :  { %v1284_v46 = vpop.permute.xlu0 %1283  ;;  %v1761_v16 = vsel %vm1747_vm6, %v1611_v18, %v1760_v56  ;;  %v1739_v48 = vsel %vm1375_vm3, %v1738_v61, %v1734_v58 }
 0x534   :  { %v1629_v19 = vrot.slane %v1284_v46, %v2935_v33  ;;  %v1725_v18 = vsel %vm1382_vm4, %v1724_v42, %v1720_v27 }
 0x536   :  { %v1630_v49 = vsel %vm1382_vm4, %v1629_v19, %v1625_v60 }
 0x537   :  { %v1762_v34 = vsel %vm1749_vm7, %v1630_v49, %v1761_v16  ;;  %v1296_v52 = vpop.permute.xlu0 %1295 }
 0x538   :  { %v1648_v26 = vrot.slane %v1296_v52, %v2935_v33 }
 0x53a   :  { %v1649_v57 = vsel %vm1382_vm4, %v1648_v26, %v1644_v13 }
 0x53b   :  { %v1308_v40 = vpop.permute.xlu0 %1307  ;;  %v1763_v36 = vsel %vm1751_vm8, %v1649_v57, %v1762_v34 }
 0x53c   :  { %v1667_v8 = vrot.slane %v1308_v40, %v2935_v33 }
 0x53e   :  { %v1668_v53 = vsel %vm1382_vm4, %v1667_v8, %v1663_v0 }
 0x53f   :  { %v1332_v45 = vpop.permute.xlu0 %1331  ;;  %v1764_v21 = vsel %vm1753_vm9, %v1668_v53, %v1763_v36 }
 0x540   :  { %v1705_v10 = vrot.slane %v1332_v45, %v2935_v33  ;;  %v1765_v3 = vsel %vm1755_vm10, %v1687_v62, %v1764_v21 }
 0x542   :  { %v1706_v25 = vsel %vm1382_vm4, %v1705_v10, %v1701_v6 }
 0x543   :  { %v1356_v37 = vpop.permute.xlu0 %1355  ;;  %v1766_v24 = vsel %vm1757_vm11, %v1706_v25, %v1765_v3 }
 0x544   :  { %v1743_v23 = vrot.slane %v1356_v37, %v2935_v33  ;;  %v1779_v20 = vsel %vm124_vm0, %v1766_v24, 0.0  ;;  %v1877_v33 = vld [vmem:[%s3211_s4] ss:$0 sm:$0xff]  ;;  %s2123_s4 = smov [#allocation5]  }
 0x545   :  { %1780 = vadd.xlane.f32.xlu0 %v1779_v20  ;;  %s1848_s30 = sshll.u32 %s2123_s4, 4  ;;  %s1849_s30 = int_to_ptr.vmem [resolvable:$true] %s1848_s30 }
 0x546   :  { %v1744_v46 = vsel %vm1382_vm4, %v1743_v23, %v1739_v48  ;;  %s2092_s6 = scalar_lea.vmem %s1849_s30, 32  ;;  %p2097_p9 = scmp.lt.s32.totalorder %s1849_s30, %s1849_s30 }
 0x547   :  { %v1767_v59 = vsel %vm1745_vm5, %v1744_v46, %v1725_v18  ;;  %p2093_p8 = scmp.ne.s32.totalorder %s1849_s30, %s2092_s6  ;;  %p2098_p10 = scmp.lt.s32.totalorder %s2092_s6, %s2092_s6 }
 0x548   :  { %v1782_v43 = vsel %vm1775_vm12, %v1767_v59, 0.0 }
 0x549   :  { %1783 = vadd.xlane.f32.xlu1 %v1782_v43  ;;  %p2099_p11 = por %p2098_p10, %p2097_p9 }
 0x54b   :  { %p2100_p12 = pnand %p2099_p11, %p2093_p8 }
 0x55a   :  { %1796 = vbcast.lane.b32.xlu1 %v1877_v33, 264 }
 0x55b   :  { %1792 = vbcast.lane.b32.xlu0 %v1877_v33, 256 }
 0x561   :  { %v1774_v9 = vpop.xlane.xlu1 %1773 }
 0x570   :  { %v1778_v19 = vpop.xlane.xlu0 %1777 }
 0x5d2   :  { %v1781_v14 = vpop.xlane.xlu0 %1780 }
 0x5d6   :  { %v1784_v60 = vpop.xlane.xlu1 %1783  ;;  %v1793_v56 = vpop.permute.xlu0 %1792 }
 0x5d7   :  { %v1800_v5 = vadd.f32 %v1793_v56, %v1774_v9  ;;  %v1802_v49 = vadd.f32 %v1793_v56, %v1781_v14 }
 0x5d9   :  { %1809 = vperm.xlu1 %2069, %v1800_v5  }
 0x5da   :  { %v1797_v16 = vpop.permute.xlu1 %1796 }
 0x5db   :  { %v1801_v34 = vadd.f32 %v1797_v16, %v1778_v19  ;;  %v1803_v52 = vadd.f32 %v1797_v16, %v1784_v60 }
 0x5dd   :  { %1812 = vperm.xlu0 %2068, %v1801_v34   ;;  %1815 = vperm.xlu1 %2069, %v1802_v49  }
 0x5e1   :  { %1818 = vperm.xlu0 %2068, %v1803_v52  }
 0x658   :  { %v1810_v39 = vpop.permute.xlu1 %1809 }
 0x659   :  { %v1823_v15 = vrot.slane %v1810_v39, %v2929_v51 }
 0x65c   :  { %v1813_v32 = vpop.permute.xlu0 %1812  ;;  %v1816_v26 = vpop.permute.xlu1 %1815 }
 0x65d   :  { %v1827_v17 = vrot.slane %v1813_v32, %v2924_v54  ;;  %v1832_v28 = vrot.slane %v1816_v26, %v2929_v51 }
 0x65f   :  { %v1828_v13 = vsel %vm1368_vm2, %v1827_v17, %v1823_v15 }
 0x660   :  { %v1819_v12 = vpop.permute.xlu0 %1818 }
 0x661   :  { %v1836_v35 = vrot.slane %v1819_v12, %v2924_v54 }
 0x663   :  { %v1837_v55 = vsel %vm1368_vm2, %v1836_v35, %v1832_v28 }
 0x664   :  { %v1838_v7 = vsel %vm1745_vm5, %v1837_v55, %v1828_v13 }
 0x665   :  { %1841 = vst.msk [vmem:[#allocation5] sm:$0x3] %vm1840_vm13, %v1838_v7 }
 0x666   :  { %2103 = shalt.err (!%p2100_p12)
}
 0x667   :  { %s2104_s7 = scalar_lea.hbm %s3212_s5, 32 }
 0x668   :  { %p2105_p13 = scmp.ne.s32.totalorder %s3212_s5, %s2104_s7  ;;  %p2108_p0 = scmp.lt.u32.totalorder %s2104_s7, %s3212_s5 }
 0x66a   :  { %p2110_p1 = pnand %p2108_p0, %p2105_p13 }
 0x66c   :  { %2113 = shalt.err (!%p2110_p1)
}
 0x66d   :  { %1851 = dma.vmem_to_hbm [thread:$0]  %s1849_s30, 32, %s3212_s5, [#allocation4]  }
 0x66e   :  { %2116 = dma.done.wait [#allocation4], 32  }
 0x66f   :  { %2117 = vsyncadd [#allocation4], 4294967264 }
 0x670   :  { %1855 = vsyncpa [#allocation3], 1 }
 0x671   :  { %1856 = vsyncpa [#allocation4], 1 }

</bundles_post_ra>
